<compile_context>
chip_gen: v5e
topology: v5e:2x2
jax: 0.10.0
libtpu: 0.0.40
codegen_flags: <defaults>
</compile_context>

<pallas_src>
import functools

import numpy as np
import jax
import jax.numpy as jnp
from jax.experimental import pallas as pl
from jax.experimental.pallas import tpu as pltpu


def _round_up(v, m):
    return ((v + m - 1) // m) * m


@functools.lru_cache(maxsize=None)
def _vmem_limit_bytes():
    # Generation-dependent scoped-VMEM budget: ~3/4 of physical capacity
    # (v5e/v6e: 96 MiB of 128; v7x: 48 MiB of 64), conservative fallback.
    cap = None
    try:
        info = pltpu.get_tpu_info()
        for name in ("vmem_capacity_bytes", "vmem_size_bytes", "vmem_bytes"):
            cap = getattr(info, name, None)
            if cap:
                break
    except Exception:
        cap = None
    if not cap:
        cap = 64 * 1024 * 1024
    return int(min(cap * 3 // 4, 112 * 1024 * 1024))


_FEAT_W = 128   # lane-dense feature slab width (total_latent_dim <= 128)
_ROW_TILE = 256  # A row tile: fills the 256-wide MXU on v6e/v7x, fine on v5e


# ----------------------------------------------------------------------------
# Fused GCN stack kernel:  h_l = tanh(A_norm @ (h_{l-1} @ W_l) + b_l)
# Grid = (num_layers, num_row_tiles); A streamed from HBM, h kept on-chip.
# ----------------------------------------------------------------------------
def _gcn_fused_kernel(layer_out_dims, tm,
                      a_ref, x_ref, w_ref, b_ref, o_ref, h_ref, xw_ref):
    # a_ref : [TM, N_pad]       bf16  row tile of A_norm (HBM-streamed)
    # x_ref : [N_pad, 128]      f32   input features (resident)
    # w_ref : [1, 128, 128]     bf16  this layer's weight
    # b_ref : [1, 1, 128]       f32   this layer's bias
    # o_ref : [N_pad, 128]      f32   lane-dense concat slab (resident output)
    # h_ref : [N_pad, 128]      f32   scratch: current node features
    # xw_ref: [N_pad, 128]      bf16  scratch: h_{l-1} @ W_l for this layer
    l = pl.program_id(0)
    i = pl.program_id(1)

    @pl.when(jnp.logical_and(l == 0, i == 0))
    def _():
        h_ref[...] = x_ref[...]
        o_ref[...] = jnp.zeros_like(o_ref)

    # XW depends only on the layer -> compute once per layer (first row tile).
    @pl.when(i == 0)
    def _():
        xw_ref[...] = jnp.dot(
            h_ref[...].astype(jnp.bfloat16), w_ref[0],
            preferred_element_type=jnp.float32).astype(jnp.bfloat16)

    row0 = pl.multiple_of(i * tm, tm)

    agg = jnp.dot(a_ref[...], xw_ref[...],
                  preferred_element_type=jnp.float32)          # [TM, 128] MXU
    h_new = jnp.tanh(agg + b_ref[0])                           # f32 VPU/EUP

    # Next layer's input (all row tiles of layer l finish before layer l+1).
    h_ref[pl.ds(row0, tm), :] = h_new

    # Scatter this layer's columns into the concat slab (static per-layer
    # offsets via pl.when branches; the slab itself is written to HBM once).
    offs = np.cumsum([0] + list(layer_out_dims))
    for lc, c_out in enumerate(layer_out_dims):
        @pl.when(l == lc)
        def _(off=int(offs[lc]), c=int(c_out)):
            o_ref[pl.ds(row0, tm), off:off + c] = h_new[:, :c]


def gcn_stack(a_norm, x, gcn):
    """Runs all GCN layers in one gridded pallas_call -> [N, total_latent_dim]."""
    n, in_dim = x.shape
    layer_out_dims = gcn["layer_out_dims"]
    total = gcn["total"]
    num_layers = len(layer_out_dims)

    tm = _ROW_TILE
    n_pad = _round_up(n, tm)           # 256-aligned rows AND lanes of A
    num_tiles = n_pad // tm

    a_p = jnp.zeros((n_pad, n_pad), jnp.bfloat16)
    a_p = a_p.at[:n, :n].set(a_norm.astype(jnp.bfloat16))
    x_p = jnp.zeros((n_pad, _FEAT_W), jnp.float32).at[:n, :in_dim].set(x)

    kernel = functools.partial(_gcn_fused_kernel, layer_out_dims, tm)
    grid_spec = pltpu.PrefetchScalarGridSpec(
        num_scalar_prefetch=0,
        grid=(num_layers, num_tiles),
        in_specs=[
            # A row tile, streamed (double-buffered) from HBM each layer.
            pl.BlockSpec((tm, n_pad), lambda l, i: (i, 0)),
            # Input features: resident for the whole grid.
            pl.BlockSpec((n_pad, _FEAT_W), lambda l, i: (0, 0)),
            # Per-layer weight / bias blocks (resident across the row axis).
            pl.BlockSpec((1, _FEAT_W, _FEAT_W), lambda l, i: (l, 0, 0)),
            pl.BlockSpec((1, 1, _FEAT_W), lambda l, i: (l, 0, 0)),
        ],
        out_specs=pl.BlockSpec((n_pad, _FEAT_W), lambda l, i: (0, 0)),
        scratch_shapes=[
            pltpu.VMEM((n_pad, _FEAT_W), jnp.float32),    # h
            pltpu.VMEM((n_pad, _FEAT_W), jnp.bfloat16),   # xw
        ],
    )
    out = pl.pallas_call(
        kernel,
        out_shape=jax.ShapeDtypeStruct((n_pad, _FEAT_W), jnp.float32),
        grid_spec=grid_spec,
        compiler_params=pltpu.CompilerParams(
            dimension_semantics=("arbitrary", "arbitrary"),
            vmem_limit_bytes=_vmem_limit_bytes()),
    )(a_p, x_p, gcn["w"], gcn["b"])
    return out[:n, :total]


# ----------------------------------------------------------------------------
# Head kernel: Conv1d(1,C1,D,D) -> ReLU -> MaxPool1d(2,2) -> Conv1d(C1,C2,kw2)
#              -> ReLU -> flatten -> Linear(dense_dim, 32)
# All GEMMs bf16 x bf16 with f32 accumulation; no lane concats.
# ----------------------------------------------------------------------------
def _head_kernel(bp, half, kw2, l2,
                 pooled_ref, w1_ref, b1_ref, w2_ref, b2_ref, wl_ref, bl_ref,
                 o_ref):
    # pooled_ref: [k*Bp, 128]    bf16  position-major rows (row = p*Bp + b)
    # w1_ref:     [128, C1]      bf16  Conv1d(1,C1,D,stride=D) weight
    # w2_ref:     [kw2, C1, C2]  bf16  Conv1d #2 weight, per-tap blocks
    # wl_ref:     [l2, C2, 128]  bf16  lin1 weight, flatten order pre-folded,
    #                                   output lanes zero-padded to 128
    # Conv1d #1 as one GEMM over all (position, graph) rows.
    y1 = jnp.dot(pooled_ref[...], w1_ref[...],
                 preferred_element_type=jnp.float32) + b1_ref[...]
    y1 = jnp.maximum(y1, 0.0)                                    # [k*Bp, C1] f32

    # MaxPool1d(2, 2) over positions: contiguous 16-aligned sublane blocks.
    y2 = jnp.concatenate(
        [jnp.maximum(y1[(2 * p) * bp:(2 * p + 1) * bp, :],
                     y1[(2 * p + 1) * bp:(2 * p + 2) * bp, :])
         for p in range(half)], axis=0).astype(jnp.bfloat16)     # [half*Bp, C1]

    # Conv1d #2 as shifted row-slab accumulation (no per-window lane concat).
    c2 = b2_ref.shape[1]
    acc = jnp.zeros((l2 * bp, c2), jnp.float32)
    for j in range(kw2):
        acc = acc + jnp.dot(y2[j * bp:(j + l2) * bp, :], w2_ref[j],
                            preferred_element_type=jnp.float32)
    y3 = jnp.maximum(acc + b2_ref[...], 0.0).astype(jnp.bfloat16)  # [l2*Bp, C2]

    # Linear; PyTorch's channel-major .view(B,-1) order is folded into the
    # wl_ref block layout at init time.
    out = jnp.zeros((bp, o_ref.shape[1]), jnp.float32)
    for q in range(l2):
        out = out + jnp.dot(y3[q * bp:(q + 1) * bp, :], wl_ref[q],
                            preferred_element_type=jnp.float32)
    o_ref[...] = out + bl_ref[...]                               # lane-dense store


def dgcnn_head(pooled, head, k):
    b_graphs, k_, d = pooled.shape
    assert k_ == k
    kw2, l2 = head["kw2"], head["l2"]
    half = k // 2

    dp = 128                                 # lane-pad the sort-pool feature dim
    bp = max(16, _round_up(b_graphs, 16))    # bf16-sublane-pad the graph batch

    # Position-major layout [k, Bp, Dp] -> [k*Bp, Dp]: maxpool / conv2 slices
    # become contiguous aligned sublane row blocks.
    pooled_pm = jnp.zeros((k, bp, dp), jnp.bfloat16)
    pooled_pm = pooled_pm.at[:, :b_graphs, :d].set(
        jnp.transpose(pooled, (1, 0, 2)).astype(jnp.bfloat16))
    pooled_pm = pooled_pm.reshape(k * bp, dp)

    vmem = pl.BlockSpec(memory_space=pltpu.MemorySpace.VMEM)
    kernel = functools.partial(_head_kernel, bp, half, kw2, l2)
    out = pl.pallas_call(
        kernel,
        out_shape=jax.ShapeDtypeStruct((bp, head["out_pad"]), jnp.float32),
        in_specs=[vmem] * 7,
        out_specs=vmem,
        compiler_params=pltpu.CompilerParams(
            vmem_limit_bytes=_vmem_limit_bytes()),
    )(pooled_pm, head["w1"], head["b1"], head["w2"], head["b2"],
      head["wl"], head["bl"])
    return out[:b_graphs, :head["out_dim"]]


# ----------------------------------------------------------------------------
# One-time parameter packing (hoisted out of the per-forward path).
# ----------------------------------------------------------------------------
def prepare_params(params, k):
    convs = params["convs"]
    layer_out_dims = tuple(int(w.shape[1]) for (w, _) in convs)
    in_dim = int(convs[0][0].shape[0])
    total = sum(layer_out_dims)
    # TODO(synk): the lane-dense 128-wide feature slab requires
    # total_latent_dim <= 128 and in_dim <= 128; larger models need tiling.
    assert total <= _FEAT_W and in_dim <= _FEAT_W
    num_layers = len(convs)

    w_stack = np.zeros((num_layers, _FEAT_W, _FEAT_W), np.float32)
    b_stack = np.zeros((num_layers, 1, _FEAT_W), np.float32)
    for l, (w, b) in enumerate(convs):
        w_np, b_np = np.asarray(w), np.asarray(b)
        w_stack[l, :w_np.shape[0], :w_np.shape[1]] = w_np
        b_stack[l, 0, :b_np.shape[0]] = b_np
    gcn = dict(
        w=jnp.asarray(w_stack, jnp.bfloat16),
        b=jnp.asarray(b_stack, jnp.float32),
        layer_out_dims=layer_out_dims,
        total=total)

    w1 = np.asarray(params["w1"]); b1 = np.asarray(params["b1"])
    w2 = np.asarray(params["w2"]); b2 = np.asarray(params["b2"])
    wl = np.asarray(params["wl"]); bl = np.asarray(params["bl"])
    c1, _, d = w1.shape
    c2, _, kw2 = w2.shape
    half = k // 2
    l2 = half - kw2 + 1
    assert d == total and wl.shape[1] == l2 * c2
    out_dim = wl.shape[0]
    out_pad = 128

    w1_t = np.zeros((_FEAT_W, c1), np.float32)
    w1_t[:d, :] = w1.reshape(c1, d).T                    # Conv1 as GEMM weight
    w2_blocks = np.transpose(w2, (2, 1, 0))              # [kw2, C1, C2]
    # Fold channel-major flatten (.view(B,-1)) into position-major wl blocks,
    # and lane-pad the 32-wide output to 128 for a lane-dense final store.
    wl_blocks = np.zeros((l2, c2, out_pad), np.float32)
    wl_blocks[:, :, :out_dim] = wl.T.reshape(c2, l2, out_dim).transpose(1, 0, 2)
    bl_r = np.zeros((1, out_pad), np.float32)
    bl_r[0, :out_dim] = bl

    head = dict(
        w1=jnp.asarray(w1_t, jnp.bfloat16),
        b1=jnp.asarray(b1.reshape(1, c1), jnp.float32),
        w2=jnp.asarray(w2_blocks, jnp.bfloat16),
        b2=jnp.asarray(b2.reshape(1, c2), jnp.float32),
        wl=jnp.asarray(wl_blocks, jnp.bfloat16),
        bl=jnp.asarray(bl_r, jnp.float32),
        kw2=kw2, l2=l2, out_dim=out_dim, out_pad=out_pad)
    return dict(gcn=gcn, head=head)


# ----------------------------------------------------------------------------
# Glue: GCN normalization, global_sort_pool (sort stays in plain JAX)
# ----------------------------------------------------------------------------
def build_gcn_norm_adj(edge_index, n):
    a = np.zeros((n, n), np.float32)
    np.add.at(a, (edge_index[0], edge_index[1]), 1.0)   # keep duplicate edges
    a = a + np.eye(n, dtype=np.float32)                 # add self loops
    deg = a.sum(axis=1)
    dinv = 1.0 / np.sqrt(deg)
    return jnp.asarray((dinv[:, None] * a) * dinv[None, :])


def global_sort_pool(x, batch_np, k):
    # x: [N, D] node features; batch_np: numpy int array of graph ids (static).
    # TODO(synk): the per-graph descending sort / ragged dense batching has no
    # clean Pallas TPU primitive, so it is done in plain JAX here (under jit).
    num_graphs = int(batch_np.max()) + 1
    counts = np.bincount(batch_np, minlength=num_graphs)
    max_nodes = int(counts.max())
    pos = np.concatenate([np.arange(c) for c in counts]).astype(np.int32)

    d = x.shape[1]
    b_idx = jnp.asarray(batch_np)
    p_idx = jnp.asarray(pos)
    dense = jnp.zeros((num_graphs, max_nodes, d), x.dtype)
    dense = dense.at[b_idx, p_idx].set(x)
    valid = jnp.zeros((num_graphs, max_nodes), bool).at[b_idx, p_idx].set(True)

    # Sort descending by last channel (invalid slots pushed to the end).
    # Note: tie-breaking may differ from torch.sort(descending=True).
    key = jnp.where(valid, dense[:, :, -1], -jnp.inf)
    order = jnp.argsort(-key, axis=1)
    dense = jnp.take_along_axis(dense, order[:, :, None], axis=1)
    valid = jnp.take_along_axis(valid, order, axis=1)
    dense = jnp.where(valid[:, :, None], dense, 0.0)

    if max_nodes >= k:
        dense = dense[:, :k]
    else:
        dense = jnp.pad(dense, ((0, 0), (0, k - max_nodes), (0, 0)))
    return dense                                  # [B, k, D]


# ----------------------------------------------------------------------------
# Full forward (jitted closure: only activation padding happens per call)
# ----------------------------------------------------------------------------
def make_dgcnn_forward(params, batch_np, k):
    packed = prepare_params(params, k)
    batch_np = np.asarray(batch_np, np.int32)

    @jax.jit
    def forward(x, a_norm):
        feat = gcn_stack(a_norm, x, packed["gcn"])    # [N, hidden*L + 1]
        pooled = global_sort_pool(feat, batch_np, k)  # [B, k, D]
        return dgcnn_head(pooled, packed["head"], k)  # [B, 32]

    return forward


def init_params(key, in_dim, hidden, num_layers, k):
    conv_dims = [(in_dim, hidden)] + [(hidden, hidden)] * (num_layers - 1) + \
                [(hidden, 1)]
    total_latent_dim = hidden * num_layers + 1
    c1, c2 = 16, 32
    kw1, kw2 = total_latent_dim, 5
    dense_dim = int((k - 2) / 2 + 1)
    dense_dim = (dense_dim - kw2 + 1) * c2

    keys = jax.random.split(key, 2 * len(conv_dims) + 6)
    it = iter(keys)
    convs = []
    for (ci, co) in conv_dims:
        w = jax.random.normal(next(it), (ci, co), jnp.float32) * 0.2
        b = jax.random.normal(next(it), (co,), jnp.float32) * 0.05
        convs.append((w, b))

    params = {
        "convs": convs,
        "w1": jax.random.normal(next(it), (c1, 1, kw1), jnp.float32) * 0.2,
        "b1": jax.random.normal(next(it), (c1,), jnp.float32) * 0.05,
        "w2": jax.random.normal(next(it), (c2, c1, kw2), jnp.float32) * 0.2,
        "b2": jax.random.normal(next(it), (c2,), jnp.float32) * 0.05,
        "wl": jax.random.normal(next(it), (32, dense_dim), jnp.float32) * 0.2,
        "bl": jax.random.normal(next(it), (32,), jnp.float32) * 0.05,
    }
    return params


# ----------------------------------------------------------------------------
# Example run
# ----------------------------------------------------------------------------
if __name__ == "__main__":
    key = jax.random.PRNGKey(0)

    # Two graphs: 12-node ring and 9-node ring (batched).
    sizes = [12, 9]
    n_total = sum(sizes)
    batch_np = np.concatenate(
        [np.full(s, g, np.int32) for g, s in enumerate(sizes)]
    )
    src, dst = [], []
    base = 0
    for s in sizes:
        for i in range(s):
            j = (i + 1) % s
            src += [base + i, base + j]
            dst += [base + j, base + i]
        base += s
    edge_index = np.stack([np.array(src, np.int32), np.array(dst, np.int32)])

    in_dim, hidden, num_layers, k = 4, 8, 3, 10
    k_key, x_key = jax.random.split(key)
    params = init_params(k_key, in_dim, hidden, num_layers, k)

    x = jax.random.normal(x_key, (n_total, in_dim), jnp.float32)
    a_norm = build_gcn_norm_adj(edge_index, n_total)

    forward = make_dgcnn_forward(params, batch_np, k)
    out = forward(x, a_norm)
    out = jax.block_until_ready(out)
    assert out.shape == (len(sizes), 32) and np.all(np.isfinite(np.asarray(out)))
    print("KERNEL_OK")
</pallas_src>

<mosaic_0001>
module attributes {stable_mosaic.version = 11 : i64} {
  func.func @_gcn_fused_kernel(%arg0: i32, %arg1: i32, %arg2: memref<256x256xbf16, #tpu.memory_space<vmem>>, %arg3: memref<256x128xf32, #tpu.memory_space<vmem>>, %arg4: memref<1x128x128xbf16, #tpu.memory_space<vmem>>, %arg5: memref<1x1x128xf32, #tpu.memory_space<vmem>>, %arg6: memref<256x128xf32, #tpu.memory_space<vmem>>, %arg7: memref<256x128xf32, #tpu.memory_space<vmem>>, %arg8: memref<256x128xbf16, #tpu.memory_space<vmem>>) attributes {dimension_semantics = [#tpu.dimension_semantics<arbitrary>, #tpu.dimension_semantics<arbitrary>], iteration_bounds = array<i64: 4, 1>, scalar_prefetch = 0 : i64, scratch_operands = 2 : i64, tpu.core_type = #tpu.core_type<tc>, window_params = [{transform_indices = @transform_0, window_bounds = array<i64: 256, 256>}, {pipeline_mode = #tpu.pipeline_mode<synchronous>, transform_indices = @transform_1, window_bounds = array<i64: 256, 128>}, {transform_indices = @transform_2, window_bounds = array<i64: 1, 128, 128>}, {transform_indices = @transform_3, window_bounds = array<i64: 1, 1, 128>}, {pipeline_mode = #tpu.pipeline_mode<synchronous>, transform_indices = @transform_4, window_bounds = array<i64: 256, 128>}]} {
    %c0_i32 = arith.constant 0 : i32
    %0 = arith.cmpi eq, %arg0, %c0_i32 : i32
    %c0_i32_0 = arith.constant 0 : i32
    %1 = arith.cmpi eq, %arg1, %c0_i32_0 : i32
    %2 = arith.andi %0, %1 : i1
    %3 = arith.extui %2 : i1 to i32
    %c0_i32_1 = arith.constant 0 : i32
    %4 = arith.cmpi ne, %3, %c0_i32_1 : i32
    scf.if %4 {
      %c0_16 = arith.constant 0 : index
      %c0_17 = arith.constant 0 : index
      %32 = vector.load %arg3[%c0_16, %c0_17] : memref<256x128xf32, #tpu.memory_space<vmem>>, vector<256x128xf32>
      %c0_18 = arith.constant 0 : index
      %c0_19 = arith.constant 0 : index
      %33 = vector.load %arg7[%c0_18, %c0_19] : memref<256x128xf32, #tpu.memory_space<vmem>>, vector<256x128xf32>
      tpu.vector_store %arg7[%c0_18, %c0_19], %32 {strides = array<i32>} : memref<256x128xf32, #tpu.memory_space<vmem>>, vector<256x128xf32>,
      %cst_20 = arith.constant 0.000000e+00 : f32
      %34 = vector.broadcast %cst_20 : f32 to vector<256x128xf32>
      %c0_21 = arith.constant 0 : index
      %c0_22 = arith.constant 0 : index
      %35 = vector.load %arg6[%c0_21, %c0_22] : memref<256x128xf32, #tpu.memory_space<vmem>>, vector<256x128xf32>
      tpu.vector_store %arg6[%c0_21, %c0_22], %34 {strides = array<i32>} : memref<256x128xf32, #tpu.memory_space<vmem>>, vector<256x128xf32>,
    } else {
    }
    %c0_i32_2 = arith.constant 0 : i32
    %5 = arith.cmpi eq, %arg1, %c0_i32_2 : i32
    %6 = arith.extui %5 : i1 to i32
    %c0_i32_3 = arith.constant 0 : i32
    %7 = arith.cmpi ne, %6, %c0_i32_3 : i32
    scf.if %7 {
      %c0_16 = arith.constant 0 : index
      %c0_17 = arith.constant 0 : index
      %32 = vector.load %arg7[%c0_16, %c0_17] : memref<256x128xf32, #tpu.memory_space<vmem>>, vector<256x128xf32>
      %33 = arith.truncf %32 : vector<256x128xf32> to vector<256x128xbf16>
      %c0_18 = arith.constant 0 : index
      %c0_19 = arith.constant 0 : index
      %c0_20 = arith.constant 0 : index
      %34 = vector.load %arg4[%c0_18, %c0_19, %c0_20] : memref<1x128x128xbf16, #tpu.memory_space<vmem>>, vector<1x128x128xbf16>
      %35 = vector.shape_cast %34 : vector<1x128x128xbf16> to vector<128x128xbf16>
      %cst_21 = arith.constant dense<0.000000e+00> : vector<256x128xf32>
      %36 = tpu.matmul %33, %35, %cst_21 {dimension_numbers = #tpu.dot_dimension_numbers<[1], [0], [0], [1], [0, 0, 1, 1], [], []>} : vector<256x128xbf16>, vector<128x128xbf16>, vector<256x128xf32> -> vector<256x128xf32>
      %37 = arith.truncf %36 : vector<256x128xf32> to vector<256x128xbf16>
      %c0_22 = arith.constant 0 : index
      %c0_23 = arith.constant 0 : index
      %38 = vector.load %arg8[%c0_22, %c0_23] : memref<256x128xbf16, #tpu.memory_space<vmem>>, vector<256x128xbf16>
      tpu.vector_store %arg8[%c0_22, %c0_23], %37 {strides = array<i32>} : memref<256x128xbf16, #tpu.memory_space<vmem>>, vector<256x128xbf16>,
    } else {
    }
    %c256_i32 = arith.constant 256 : i32
    %8 = arith.muli %arg1, %c256_i32 : i32
    %9 = tpu.assume_multiple %8, 256 : i32
    %c0 = arith.constant 0 : index
    %c0_4 = arith.constant 0 : index
    %10 = vector.load %arg2[%c0, %c0_4] : memref<256x256xbf16, #tpu.memory_space<vmem>>, vector<256x256xbf16>
    %c0_5 = arith.constant 0 : index
    %c0_6 = arith.constant 0 : index
    %11 = vector.load %arg8[%c0_5, %c0_6] : memref<256x128xbf16, #tpu.memory_space<vmem>>, vector<256x128xbf16>
    %cst = arith.constant dense<0.000000e+00> : vector<256x128xf32>
    %12 = tpu.matmul %10, %11, %cst {dimension_numbers = #tpu.dot_dimension_numbers<[1], [0], [0], [1], [0, 0, 1, 1], [], []>} : vector<256x256xbf16>, vector<256x128xbf16>, vector<256x128xf32> -> vector<256x128xf32>
    %c0_7 = arith.constant 0 : index
    %c0_8 = arith.constant 0 : index
    %c0_9 = arith.constant 0 : index
    %13 = vector.load %arg5[%c0_7, %c0_8, %c0_9] : memref<1x1x128xf32, #tpu.memory_space<vmem>>, vector<1x1x128xf32>
    %14 = vector.shape_cast %13 : vector<1x1x128xf32> to vector<1x128xf32>
    %15 = vector.broadcast %14 : vector<1x128xf32> to vector<256x128xf32>
    %16 = arith.addf %12, %15 : vector<256x128xf32>
    %17 = math.tanh %16 : vector<256x128xf32>
    %18 = arith.index_cast %9 : i32 to index
    %c0_10 = arith.constant 0 : index
    %19 = vector.load %arg7[%18, %c0_10] : memref<256x128xf32, #tpu.memory_space<vmem>>, vector<256x128xf32>
    tpu.vector_store %arg7[%18, %c0_10], %17 {strides = array<i32>} : memref<256x128xf32, #tpu.memory_space<vmem>>, vector<256x128xf32>,
    %c0_i32_11 = arith.constant 0 : i32
    %20 = arith.cmpi eq, %arg0, %c0_i32_11 : i32
    %21 = arith.extui %20 : i1 to i32
    %c0_i32_12 = arith.constant 0 : i32
    %22 = arith.cmpi ne, %21, %c0_i32_12 : i32
    scf.if %22 {
      %32 = vector.extract_strided_slice %17 {offsets = [0, 0], sizes = [256, 8], strides = [1, 1]} : vector<256x128xf32> to vector<256x8xf32>
      %33 = arith.index_cast %9 : i32 to index
      %c0_16 = arith.constant 0 : index
      %34 = vector.load %arg6[%33, %c0_16] : memref<256x128xf32, #tpu.memory_space<vmem>>, vector<256x8xf32>
      tpu.vector_store %arg6[%33, %c0_16], %32 {strides = array<i32>} : memref<256x128xf32, #tpu.memory_space<vmem>>, vector<256x8xf32>,
    } else {
    }
    %c1_i32 = arith.constant 1 : i32
    %23 = arith.cmpi eq, %arg0, %c1_i32 : i32
    %24 = arith.extui %23 : i1 to i32
    %c0_i32_13 = arith.constant 0 : i32
    %25 = arith.cmpi ne, %24, %c0_i32_13 : i32
    scf.if %25 {
      %32 = vector.extract_strided_slice %17 {offsets = [0, 0], sizes = [256, 8], strides = [1, 1]} : vector<256x128xf32> to vector<256x8xf32>
      %33 = arith.index_cast %9 : i32 to index
      %c8 = arith.constant 8 : index
      %34 = vector.load %arg6[%33, %c8] : memref<256x128xf32, #tpu.memory_space<vmem>>, vector<256x8xf32>
      tpu.vector_store %arg6[%33, %c8], %32 {strides = array<i32>} : memref<256x128xf32, #tpu.memory_space<vmem>>, vector<256x8xf32>,
    } else {
    }
    %c2_i32 = arith.constant 2 : i32
    %26 = arith.cmpi eq, %arg0, %c2_i32 : i32
    %27 = arith.extui %26 : i1 to i32
    %c0_i32_14 = arith.constant 0 : i32
    %28 = arith.cmpi ne, %27, %c0_i32_14 : i32
    scf.if %28 {
      %32 = vector.extract_strided_slice %17 {offsets = [0, 0], sizes = [256, 8], strides = [1, 1]} : vector<256x128xf32> to vector<256x8xf32>
      %33 = arith.index_cast %9 : i32 to index
      %c16 = arith.constant 16 : index
      %34 = vector.load %arg6[%33, %c16] : memref<256x128xf32, #tpu.memory_space<vmem>>, vector<256x8xf32>
      tpu.vector_store %arg6[%33, %c16], %32 {strides = array<i32>} : memref<256x128xf32, #tpu.memory_space<vmem>>, vector<256x8xf32>,
    } else {
    }
    %c3_i32 = arith.constant 3 : i32
    %29 = arith.cmpi eq, %arg0, %c3_i32 : i32
    %30 = arith.extui %29 : i1 to i32
    %c0_i32_15 = arith.constant 0 : i32
    %31 = arith.cmpi ne, %30, %c0_i32_15 : i32
    scf.if %31 {
      %32 = vector.extract_strided_slice %17 {offsets = [0, 0], sizes = [256, 1], strides = [1, 1]} : vector<256x128xf32> to vector<256x1xf32>
      %33 = arith.index_cast %9 : i32 to index
      %c24 = arith.constant 24 : index
      %34 = vector.load %arg6[%33, %c24] : memref<256x128xf32, #tpu.memory_space<vmem>>, vector<256x1xf32>
      tpu.vector_store %arg6[%33, %c24], %32 {strides = array<i32>} : memref<256x128xf32, #tpu.memory_space<vmem>>, vector<256x1xf32>,
    } else {
    }
    return
  }
  func.func @transform_0(%arg0: i32, %arg1: i32) -> (i32, i32) {
    %c0_i32 = arith.constant 0 : i32
    %c0_i32_0 = arith.constant 0 : i32
    return %arg1, %c0_i32 : i32, i32
  }
  func.func @transform_1(%arg0: i32, %arg1: i32) -> (i32, i32) {
    %c0_i32 = arith.constant 0 : i32
    %c0_i32_0 = arith.constant 0 : i32
    %c0_i32_1 = arith.constant 0 : i32
    return %c0_i32, %c0_i32_0 : i32, i32
  }
  func.func @transform_2(%arg0: i32, %arg1: i32) -> (i32, i32, i32) {
    %c0_i32 = arith.constant 0 : i32
    %c0_i32_0 = arith.constant 0 : i32
    %c0_i32_1 = arith.constant 0 : i32
    return %arg0, %c0_i32, %c0_i32_0 : i32, i32, i32
  }
  func.func @transform_3(%arg0: i32, %arg1: i32) -> (i32, i32, i32) {
    %c0_i32 = arith.constant 0 : i32
    %c0_i32_0 = arith.constant 0 : i32
    %c0_i32_1 = arith.constant 0 : i32
    return %arg0, %c0_i32, %c0_i32_0 : i32, i32, i32
  }
  func.func @transform_4(%arg0: i32, %arg1: i32) -> (i32, i32) {
    %c0_i32 = arith.constant 0 : i32
    %c0_i32_0 = arith.constant 0 : i32
    %c0_i32_1 = arith.constant 0 : i32
    return %c0_i32, %c0_i32_0 : i32, i32
  }
}

module attributes {stable_mosaic.version = 11 : i64} {
  func.func @_head_kernel(%arg0: memref<160x128xbf16, #tpu.memory_space<vmem>>, %arg1: memref<128x16xbf16, #tpu.memory_space<vmem>>, %arg2: memref<1x16xf32, #tpu.memory_space<vmem>>, %arg3: memref<5x16x32xbf16, #tpu.memory_space<vmem>>, %arg4: memref<1x32xf32, #tpu.memory_space<vmem>>, %arg5: memref<1x32x128xbf16, #tpu.memory_space<vmem>>, %arg6: memref<1x128xf32, #tpu.memory_space<vmem>>, %arg7: memref<16x128xf32, #tpu.memory_space<vmem>>) attributes {dimension_semantics = [], scalar_prefetch = 0 : i64, scratch_operands = 0 : i64, tpu.core_type = #tpu.core_type<tc>} {
    %c0 = arith.constant 0 : index
    %c0_0 = arith.constant 0 : index
    %0 = vector.load %arg0[%c0, %c0_0] : memref<160x128xbf16, #tpu.memory_space<vmem>>, vector<160x128xbf16>
    %c0_1 = arith.constant 0 : index
    %c0_2 = arith.constant 0 : index
    %1 = vector.load %arg1[%c0_1, %c0_2] : memref<128x16xbf16, #tpu.memory_space<vmem>>, vector<128x16xbf16>
    %cst = arith.constant dense<0.000000e+00> : vector<160x16xf32>
    %2 = tpu.matmul %0, %1, %cst {dimension_numbers = #tpu.dot_dimension_numbers<[1], [0], [0], [1], [0, 0, 1, 1], [], []>} : vector<160x128xbf16>, vector<128x16xbf16>, vector<160x16xf32> -> vector<160x16xf32>
    %c0_3 = arith.constant 0 : index
    %c0_4 = arith.constant 0 : index
    %3 = vector.load %arg2[%c0_3, %c0_4] : memref<1x16xf32, #tpu.memory_space<vmem>>, vector<1x16xf32>
    %4 = vector.broadcast %3 : vector<1x16xf32> to vector<160x16xf32>
    %5 = arith.addf %2, %4 : vector<160x16xf32>
    %cst_5 = arith.constant 0.000000e+00 : f32
    %6 = vector.broadcast %cst_5 : f32 to vector<160x16xf32>
    %7 = arith.maximumf %5, %6 : vector<160x16xf32>
    %8 = vector.extract_strided_slice %7 {offsets = [0, 0], sizes = [16, 16], strides = [1, 1]} : vector<160x16xf32> to vector<16x16xf32>
    %9 = vector.extract_strided_slice %7 {offsets = [16, 0], sizes = [16, 16], strides = [1, 1]} : vector<160x16xf32> to vector<16x16xf32>
    %10 = arith.maximumf %8, %9 : vector<16x16xf32>
    %11 = vector.extract_strided_slice %7 {offsets = [32, 0], sizes = [16, 16], strides = [1, 1]} : vector<160x16xf32> to vector<16x16xf32>
    %12 = vector.extract_strided_slice %7 {offsets = [48, 0], sizes = [16, 16], strides = [1, 1]} : vector<160x16xf32> to vector<16x16xf32>
    %13 = arith.maximumf %11, %12 : vector<16x16xf32>
    %14 = vector.extract_strided_slice %7 {offsets = [64, 0], sizes = [16, 16], strides = [1, 1]} : vector<160x16xf32> to vector<16x16xf32>
    %15 = vector.extract_strided_slice %7 {offsets = [80, 0], sizes = [16, 16], strides = [1, 1]} : vector<160x16xf32> to vector<16x16xf32>
    %16 = arith.maximumf %14, %15 : vector<16x16xf32>
    %17 = vector.extract_strided_slice %7 {offsets = [96, 0], sizes = [16, 16], strides = [1, 1]} : vector<160x16xf32> to vector<16x16xf32>
    %18 = vector.extract_strided_slice %7 {offsets = [112, 0], sizes = [16, 16], strides = [1, 1]} : vector<160x16xf32> to vector<16x16xf32>
    %19 = arith.maximumf %17, %18 : vector<16x16xf32>
    %20 = vector.extract_strided_slice %7 {offsets = [128, 0], sizes = [16, 16], strides = [1, 1]} : vector<160x16xf32> to vector<16x16xf32>
    %21 = vector.extract_strided_slice %7 {offsets = [144, 0], sizes = [16, 16], strides = [1, 1]} : vector<160x16xf32> to vector<16x16xf32>
    %22 = arith.maximumf %20, %21 : vector<16x16xf32>
    %23 = tpu.concatenate %10, %13, %16, %19, %22 in 0 : vector<16x16xf32>, vector<16x16xf32>, vector<16x16xf32>, vector<16x16xf32>, vector<16x16xf32> -> vector<80x16xf32>
    %24 = arith.truncf %23 : vector<80x16xf32> to vector<80x16xbf16>
    %cst_6 = arith.constant 0.000000e+00 : f32
    %25 = vector.broadcast %cst_6 : f32 to vector<16x32xf32>
    %26 = vector.extract_strided_slice %24 {offsets = [0, 0], sizes = [16, 16], strides = [1, 1]} : vector<80x16xbf16> to vector<16x16xbf16>
    %c0_7 = arith.constant 0 : index
    %c0_8 = arith.constant 0 : index
    %c0_9 = arith.constant 0 : index
    %27 = vector.load %arg3[%c0_7, %c0_8, %c0_9] : memref<5x16x32xbf16, #tpu.memory_space<vmem>>, vector<1x16x32xbf16>
    %28 = vector.shape_cast %27 : vector<1x16x32xbf16> to vector<16x32xbf16>
    %cst_10 = arith.constant dense<0.000000e+00> : vector<16x32xf32>
    %29 = tpu.matmul %26, %28, %cst_10 {dimension_numbers = #tpu.dot_dimension_numbers<[1], [0], [0], [1], [0, 0, 1, 1], [], []>} : vector<16x16xbf16>, vector<16x32xbf16>, vector<16x32xf32> -> vector<16x32xf32>
    %30 = arith.addf %25, %29 : vector<16x32xf32>
    %31 = vector.extract_strided_slice %24 {offsets = [16, 0], sizes = [16, 16], strides = [1, 1]} : vector<80x16xbf16> to vector<16x16xbf16>
    %c1 = arith.constant 1 : index
    %c0_11 = arith.constant 0 : index
    %c0_12 = arith.constant 0 : index
    %32 = vector.load %arg3[%c1, %c0_11, %c0_12] : memref<5x16x32xbf16, #tpu.memory_space<vmem>>, vector<1x16x32xbf16>
    %33 = vector.shape_cast %32 : vector<1x16x32xbf16> to vector<16x32xbf16>
    %cst_13 = arith.constant dense<0.000000e+00> : vector<16x32xf32>
    %34 = tpu.matmul %31, %33, %cst_13 {dimension_numbers = #tpu.dot_dimension_numbers<[1], [0], [0], [1], [0, 0, 1, 1], [], []>} : vector<16x16xbf16>, vector<16x32xbf16>, vector<16x32xf32> -> vector<16x32xf32>
    %35 = arith.addf %30, %34 : vector<16x32xf32>
    %36 = vector.extract_strided_slice %24 {offsets = [32, 0], sizes = [16, 16], strides = [1, 1]} : vector<80x16xbf16> to vector<16x16xbf16>
    %c2 = arith.constant 2 : index
    %c0_14 = arith.constant 0 : index
    %c0_15 = arith.constant 0 : index
    %37 = vector.load %arg3[%c2, %c0_14, %c0_15] : memref<5x16x32xbf16, #tpu.memory_space<vmem>>, vector<1x16x32xbf16>
    %38 = vector.shape_cast %37 : vector<1x16x32xbf16> to vector<16x32xbf16>
    %cst_16 = arith.constant dense<0.000000e+00> : vector<16x32xf32>
    %39 = tpu.matmul %36, %38, %cst_16 {dimension_numbers = #tpu.dot_dimension_numbers<[1], [0], [0], [1], [0, 0, 1, 1], [], []>} : vector<16x16xbf16>, vector<16x32xbf16>, vector<16x32xf32> -> vector<16x32xf32>
    %40 = arith.addf %35, %39 : vector<16x32xf32>
    %41 = vector.extract_strided_slice %24 {offsets = [48, 0], sizes = [16, 16], strides = [1, 1]} : vector<80x16xbf16> to vector<16x16xbf16>
    %c3 = arith.constant 3 : index
    %c0_17 = arith.constant 0 : index
    %c0_18 = arith.constant 0 : index
    %42 = vector.load %arg3[%c3, %c0_17, %c0_18] : memref<5x16x32xbf16, #tpu.memory_space<vmem>>, vector<1x16x32xbf16>
    %43 = vector.shape_cast %42 : vector<1x16x32xbf16> to vector<16x32xbf16>
    %cst_19 = arith.constant dense<0.000000e+00> : vector<16x32xf32>
    %44 = tpu.matmul %41, %43, %cst_19 {dimension_numbers = #tpu.dot_dimension_numbers<[1], [0], [0], [1], [0, 0, 1, 1], [], []>} : vector<16x16xbf16>, vector<16x32xbf16>, vector<16x32xf32> -> vector<16x32xf32>
    %45 = arith.addf %40, %44 : vector<16x32xf32>
    %46 = vector.extract_strided_slice %24 {offsets = [64, 0], sizes = [16, 16], strides = [1, 1]} : vector<80x16xbf16> to vector<16x16xbf16>
    %c4 = arith.constant 4 : index
    %c0_20 = arith.constant 0 : index
    %c0_21 = arith.constant 0 : index
    %47 = vector.load %arg3[%c4, %c0_20, %c0_21] : memref<5x16x32xbf16, #tpu.memory_space<vmem>>, vector<1x16x32xbf16>
    %48 = vector.shape_cast %47 : vector<1x16x32xbf16> to vector<16x32xbf16>
    %cst_22 = arith.constant dense<0.000000e+00> : vector<16x32xf32>
    %49 = tpu.matmul %46, %48, %cst_22 {dimension_numbers = #tpu.dot_dimension_numbers<[1], [0], [0], [1], [0, 0, 1, 1], [], []>} : vector<16x16xbf16>, vector<16x32xbf16>, vector<16x32xf32> -> vector<16x32xf32>
    %50 = arith.addf %45, %49 : vector<16x32xf32>
    %c0_23 = arith.constant 0 : index
    %c0_24 = arith.constant 0 : index
    %51 = vector.load %arg4[%c0_23, %c0_24] : memref<1x32xf32, #tpu.memory_space<vmem>>, vector<1x32xf32>
    %52 = vector.broadcast %51 : vector<1x32xf32> to vector<16x32xf32>
    %53 = arith.addf %50, %52 : vector<16x32xf32>
    %cst_25 = arith.constant 0.000000e+00 : f32
    %54 = vector.broadcast %cst_25 : f32 to vector<16x32xf32>
    %55 = arith.maximumf %53, %54 : vector<16x32xf32>
    %56 = arith.truncf %55 : vector<16x32xf32> to vector<16x32xbf16>
    %cst_26 = arith.constant 0.000000e+00 : f32
    %57 = vector.broadcast %cst_26 : f32 to vector<16x128xf32>
    %c0_27 = arith.constant 0 : index
    %c0_28 = arith.constant 0 : index
    %c0_29 = arith.constant 0 : index
    %58 = vector.load %arg5[%c0_27, %c0_28, %c0_29] : memref<1x32x128xbf16, #tpu.memory_space<vmem>>, vector<1x32x128xbf16>
    %59 = vector.shape_cast %58 : vector<1x32x128xbf16> to vector<32x128xbf16>
    %cst_30 = arith.constant dense<0.000000e+00> : vector<16x128xf32>
    %60 = tpu.matmul %56, %59, %cst_30 {dimension_numbers = #tpu.dot_dimension_numbers<[1], [0], [0], [1], [0, 0, 1, 1], [], []>} : vector<16x32xbf16>, vector<32x128xbf16>, vector<16x128xf32> -> vector<16x128xf32>
    %61 = arith.addf %57, %60 : vector<16x128xf32>
    %c0_31 = arith.constant 0 : index
    %c0_32 = arith.constant 0 : index
    %62 = vector.load %arg6[%c0_31, %c0_32] : memref<1x128xf32, #tpu.memory_space<vmem>>, vector<1x128xf32>
    %63 = vector.broadcast %62 : vector<1x128xf32> to vector<16x128xf32>
    %64 = arith.addf %61, %63 : vector<16x128xf32>
    %c0_33 = arith.constant 0 : index
    %c0_34 = arith.constant 0 : index
    %65 = vector.load %arg7[%c0_33, %c0_34] : memref<16x128xf32, #tpu.memory_space<vmem>>, vector<16x128xf32>
    tpu.vector_store %arg7[%c0_33, %c0_34], %64 {strides = array<i32>} : memref<16x128xf32, #tpu.memory_space<vmem>>, vector<16x128xf32>,
    return
  }
}

</mosaic_0001>

<bundles_post_ra>
// kernel: forward.3
= control target key start
LH: loop header
LB: loop body
LE: loop exit
PB: predicated region body
PF: predicated region fallthrough
CT: control target
= control target key end

     0   :  { %vm290_vm0 = vcmask 130048   ;;  %vm464_vm1 = vcmask 261120   ;;  %s811_s1 = inlined_call_operand.vmem [shape: bf16[128,16], index: 1, kind: input, shape index: {}]   ;;  %s812_s2 = inlined_call_operand.vmem [shape: f32[1,16], index: 2, kind: input, shape index: {}]   ;;  %s813_s0 = inlined_call_operand.vmem [shape: bf16[160,128], index: 0, kind: input, shape index: {}]   ;;  %s814_s3 = inlined_call_operand.vmem [shape: bf16[5,16,32], index: 3, kind: input, shape index: {}]   ;;  %s815_s4 = inlined_call_operand.vmem [shape: f32[1,32], index: 4, kind: input, shape index: {}]   ;;  %s816_s6 = inlined_call_operand.vmem [shape: f32[1,128], index: 6, kind: input, shape index: {}]   ;;  %s817_s5 = inlined_call_operand.vmem [shape: bf16[1,32,128], index: 5, kind: input, shape index: {}]   ;;  %s818_s7 = inlined_call_operand.vmem [shape: f32[16,128], index: 7, kind: output, shape index: {}]  }
   0x1   :  { %v619_v0 = vld [vmem:[%s811_s1 + $0x38] sm:$0xff]  ;;  %v618_v1 = vld [vmem:[%s811_s1 + $0x30] sm:$0xff]  ;;  %v617_v2 = vld [vmem:[%s811_s1 + $0x28] sm:$0xff] }
   0x2   :  { %175 = vmatpush.bf16.msra.mxu0 %v619_v0  ;;  %627 = vmatpush.bf16.msra.mxu1 %v619_v0  ;;  %v616_v3 = vld [vmem:[%s811_s1 + $0x20] sm:$0xff]  ;;  %v615_v4 = vld [vmem:[%s811_s1 + $0x18] sm:$0xff]  ;;  %v614_v5 = vld [vmem:[%s811_s1 + $0x10] sm:$0xff] }
   0x3   :  { %629 = vmatpush.bf16.msra.mxu3 %v619_v0  ;;  %628 = vmatpush.bf16.msra.mxu2 %v619_v0  ;;  %v613_v6 = vld [vmem:[%s811_s1 + $0x8] sm:$0xff]  ;;  %v612_v7 = vld [vmem:[%s811_s1] sm:$0xff]  ;;  %v608_v11 = vld [vmem:[%s813_s0 + $0x30] sm:$0xff] }
   0x4   :  { %v602_v8 = vld [vmem:[%s813_s0] sm:$0xff]  ;;  %v603_v12 = vld [vmem:[%s813_s0 + $0x8] sm:$0xff]  ;;  %v609_v15 = vld [vmem:[%s813_s0 + $0x38] sm:$0xff] }
   0x5   :  { %v606_v9 = vld [vmem:[%s813_s0 + $0x20] sm:$0xff]  ;;  %v607_v13 = vld [vmem:[%s813_s0 + $0x28] sm:$0xff]  ;;  %v604_v16 = vld [vmem:[%s813_s0 + $0x10] sm:$0xff] }
   0x6   :  { %176 = vmatpush.bf16.msra.mxu0 %v618_v1  ;;  %630 = vmatpush.bf16.msra.mxu1 %v618_v1  ;;  %v610_v10 = vld [vmem:[%s813_s0 + $0x40] sm:$0xff]  ;;  %v611_v14 = vld [vmem:[%s813_s0 + $0x48] sm:$0xff]  ;;  %v605_v17 = vld [vmem:[%s813_s0 + $0x18] sm:$0xff] }
   0x7   :  { %632 = vmatpush.bf16.msra.mxu3 %v618_v1  ;;  %631 = vmatpush.bf16.msra.mxu2 %v618_v1  ;;  %v620_v20 = vld [vmem:[%s814_s3] sm:$0xff]  ;;  %v621_v21 = vld [vmem:[%s814_s3 + $0x8] sm:$0xff]  ;;  %v622_v25 = vld [vmem:[%s814_s3 + $0x10] sm:$0xff] }
   0x8   :  { %v760_v26 = vld [vmem:[%s812_s2] ss:$0 sm:$0xff] }
   0x9   :  { %v624_v31 = vld [vmem:[%s814_s3 + $0x20] sm:$0xff] }
   0xa   :  { %177 = vmatpush.bf16.msra.mxu0 %v617_v2  ;;  %633 = vmatpush.bf16.msra.mxu1 %v617_v2 }
   0xb   :  { %635 = vmatpush.bf16.msra.mxu3 %v617_v2  ;;  %634 = vmatpush.bf16.msra.mxu2 %v617_v2 }
   0xe   :  { %178 = vmatpush.bf16.msra.mxu0 %v616_v3  ;;  %636 = vmatpush.bf16.msra.mxu1 %v616_v3 }
   0xf   :  { %638 = vmatpush.bf16.msra.mxu3 %v616_v3  ;;  %637 = vmatpush.bf16.msra.mxu2 %v616_v3 }
  0x12   :  { %179 = vmatpush.bf16.msra.mxu0 %v615_v4  ;;  %639 = vmatpush.bf16.msra.mxu1 %v615_v4 }
  0x13   :  { %641 = vmatpush.bf16.msra.mxu3 %v615_v4  ;;  %640 = vmatpush.bf16.msra.mxu2 %v615_v4 }
  0x16   :  { %180 = vmatpush.bf16.msra.mxu0 %v614_v5  ;;  %642 = vmatpush.bf16.msra.mxu1 %v614_v5 }
  0x17   :  { %644 = vmatpush.bf16.msra.mxu3 %v614_v5  ;;  %643 = vmatpush.bf16.msra.mxu2 %v614_v5 }
  0x1a   :  { %181 = vmatpush.bf16.msra.mxu0 %v613_v6  ;;  %645 = vmatpush.bf16.msra.mxu1 %v613_v6 }
  0x1b   :  { %647 = vmatpush.bf16.msra.mxu3 %v613_v6  ;;  %646 = vmatpush.bf16.msra.mxu2 %v613_v6 }
  0x1e   :  { %182 = vmatpush.bf16.msra.mxu0 %v612_v7  ;;  %648 = vmatpush.bf16.msra.mxu1 %v612_v7 }
  0x1f   :  { %650 = vmatpush.bf16.msra.mxu3 %v612_v7  ;;  %649 = vmatpush.bf16.msra.mxu2 %v612_v7 }
  0x21   :  { %183 = vmatmul.bf16.vlgmr.msra.gmra.mxu0 %v602_v8  ;;  %203 = vmatmul.bf16.vlgmr.msra.gmra.mxu1 %v606_v9 }
  0x22   :  { %223 = vmatmul.bf16.vlgmr.msra.gmra.mxu3 %v610_v10  ;;  %213 = vmatmul.bf16.vlgmr.msra.gmra.mxu2 %v608_v11 }
  0x23   :  { %329 = vmatpush.bf16.msrb.mxu2 %v620_v20  ;;  %301 = vmatpush.bf16.msrb.mxu1 %v621_v21 }
  0x24   :  { %360 = vmatpush.bf16.msrb.mxu3 %v622_v25 }
  0x27   :  { %426 = vmatpush.bf16.msra.mxu2 %v624_v31 }
  0x31   :  { %188 = vmatmul.bf16.gmra.mxu0 %v603_v12  ;;  %208 = vmatmul.bf16.gmra.mxu1 %v607_v13  ;;  %v623_v13 = vld [vmem:[%s814_s3 + $0x18] sm:$0xff] }
  0x32   :  { %228 = vmatmul.bf16.gmra.mxu3 %v611_v14  ;;  %218 = vmatmul.bf16.gmra.mxu2 %v609_v15 }
  0x33   :  { %393 = vmatpush.bf16.msra.mxu1 %v623_v13 }
  0x41   :  { %193 = vmatmul.bf16.gmra.mxu0 %v604_v16 }
  0x51   :  { %198 = vmatmul.bf16.gmra.mxu0 %v605_v17 }
  0x9e   :  { %v184_v18 = vpop.f32.mrf.mxu0  ;;  %v204_v19 = vpop.f32.mrf.mxu1 }
  0x9f   :  { %v205_v27 = vadd.f32 %v760_v26, %v204_v19  ;;  %v185_v34 = vadd.f32 %v760_v26, %v184_v18 }
  0xa1   :  { %v242_v35 = vmax.f32 %v205_v27, 0.0  ;;  %v234_v39 = vmax.f32 %v185_v34, 0.0 }
  0xa5   :  { %v224_v22 = vpop.f32.mrf.mxu3  ;;  %v214_v59 = vpop.f32.mrf.mxu2 }
  0xa6   :  { %v186_v23 = vpop.f32.mrf.mxu0  ;;  %v206_v24 = vpop.f32.mrf.mxu1  ;;  %v225_v53 = vadd.f32 %v760_v26, %v224_v22 }
  0xa7   :  { %v207_v38 = vadd.f32 %v760_v26, %v206_v24  ;;  %v187_v40 = vadd.f32 %v760_v26, %v186_v23 }
  0xa8   :  { %v250_v0 = vmax.f32 %v225_v53, 0.0 }
  0xa9   :  { %v243_v46 = vmax.f32 %v207_v38, 0.0  ;;  %v235_v49 = vmax.f32 %v187_v40, 0.0 }
  0xad   :  { %v226_v28 = vpop.f32.mrf.mxu3  ;;  %v216_v14 = vpop.f32.mrf.mxu2 }
  0xae   :  { %v189_v29 = vpop.f32.mrf.mxu0  ;;  %v209_v30 = vpop.f32.mrf.mxu1  ;;  %v227_v54 = vadd.f32 %v760_v26, %v226_v28  ;;  %v217_v38 = vadd.f32 %v760_v26, %v216_v14 }
  0xaf   :  { %v190_v32 = vadd.f32 %v760_v26, %v189_v29  ;;  %v210_v33 = vadd.f32 %v760_v26, %v209_v30 }
  0xb0   :  { %v251_v1 = vmax.f32 %v227_v54, 0.0 }
  0xb1   :  { %v244_v36 = vmax.f32 %v210_v33, 0.0  ;;  %v236_v37 = vmax.f32 %v190_v32, 0.0 }
  0xb3   :  { %v258_v41 = vmax.f32 %v242_v35, %v244_v36  ;;  %v254_v45 = vmax.f32 %v234_v39, %v236_v37  ;;  %v215_v37 = vadd.f32 %v760_v26, %v214_v59 }
  0xb5   :  { %v229_v42 = vpop.f32.mrf.mxu3  ;;  %v268_v51 = vpack.c.bf16 %v258_v41, %v258_v41  ;;  %v264_v55 = vpack.c.bf16 %v254_v45, %v254_v45  ;;  %v219_v23 = vpop.f32.mrf.mxu2  ;;  %v247_v45 = vmax.f32 %v217_v38, 0.0 }
  0xb6   :  { %v191_v43 = vpop.f32.mrf.mxu0  ;;  %v211_v44 = vpop.f32.mrf.mxu1  ;;  %v230_v58 = vadd.f32 %v760_v26, %v229_v42  ;;  %v220_v39 = vadd.f32 %v760_v26, %v219_v23 }
  0xb7   :  { %v192_v47 = vadd.f32 %v760_v26, %v191_v43  ;;  %v212_v48 = vadd.f32 %v760_v26, %v211_v44  ;;  %v341_v61 = vunpack.c.l.b16 %v268_v51  ;;  %v310_v4 = vunpack.c.l.b16 %v264_v55 }
  0xb8   :  { %v252_v7 = vmax.f32 %v230_v58, 0.0  ;;  %v246_v44 = vmax.f32 %v215_v37, 0.0 }
  0xb9   :  { %v237_v50 = vmax.f32 %v192_v47, 0.0  ;;  %v245_v52 = vmax.f32 %v212_v48, 0.0 }
  0xba   :  { %v262_v11 = vmax.f32 %v250_v0, %v252_v7 }
  0xbb   :  { %v255_v56 = vmax.f32 %v235_v49, %v237_v50  ;;  %v259_v57 = vmax.f32 %v243_v46, %v245_v52  ;;  %v248_v46 = vmax.f32 %v220_v39, 0.0 }
  0xbc   :  { %v272_v16 = vpack.c.bf16 %v262_v11, %v262_v11 }
  0xbd   :  { %v265_v60 = vpack.c.bf16 %v255_v56, %v255_v56  ;;  %v269_v62 = vpack.c.bf16 %v259_v57, %v259_v57  ;;  %v231_v63 = vpop.f32.mrf.mxu3  ;;  %v221_v34 = vpop.f32.mrf.mxu2  ;;  %v260_v49 = vmax.f32 %v246_v44, %v248_v46  ;;  %v625_v57 = vld [vmem:[%s817_s5] sm:$0xff] }
  0xbe   :  { %v194_v2 = vpop.f32.mrf.mxu0  ;;  %v232_v3 = vadd.f32 %v760_v26, %v231_v63  ;;  %v407_v18 = vunpack.c.l.b16 %v272_v16  ;;  %v222_v40 = vadd.f32 %v760_v26, %v221_v34 }
  0xbf   :  { %v311_v5 = vunpack.c.l.b16 %v265_v60  ;;  %v342_v6 = vunpack.c.l.b16 %v269_v62  ;;  %v195_v24 = vadd.f32 %v760_v26, %v194_v2  ;;  %v270_v51 = vpack.c.bf16 %v260_v49, %v260_v49 }
  0xc0   :  { %v253_v8 = vmax.f32 %v232_v3, 0.0  ;;  %v249_v47 = vmax.f32 %v222_v40, 0.0 }
  0xc1   :  { %v312_v9 = vpack.c.b16 %v311_v5, %v310_v4  ;;  %v343_v10 = vpack.c.b16 %v342_v6, %v341_v61  ;;  %v238_v27 = vmax.f32 %v195_v24, 0.0  ;;  %v374_v53 = vunpack.c.l.b16 %v270_v51  ;;  %v652_v6 = vld [vmem:[%s815_s4] ss:$0 sm:$0xff] }
  0xc2   :  { %v263_v12 = vmax.f32 %v251_v1, %v253_v8  ;;  %v261_v50 = vmax.f32 %v247_v45, %v249_v47 }
  0xc3   :  { %571 = vmatmul.msk.bf16.vlgmr.msrb.gmra.mxu2 %vm290_vm0, %v312_v9  ;;  %578 = vmatmul.msk.bf16.vlgmr.msrb.gmra.mxu3 %vm290_vm0, %v343_v10 }
  0xc4   :  { %v273_v17 = vpack.c.bf16 %v263_v12, %v263_v12  ;;  %v271_v52 = vpack.c.bf16 %v261_v50, %v261_v50 }
  0xc6   :  { %v196_v15 = vpop.f32.mrf.mxu0  ;;  %v408_v19 = vunpack.c.l.b16 %v273_v17  ;;  %v375_v54 = vunpack.c.l.b16 %v271_v52  ;;  %v653_v17 = vld [vmem:[%s816_s6] ss:$0 sm:$0xff] }
  0xc7   :  { %v197_v28 = vadd.f32 %v760_v26, %v196_v15 }
  0xc8   :  { %v409_v21 = vpack.c.b16 %v408_v19, %v407_v18  ;;  %v376_v55 = vpack.c.b16 %v375_v54, %v374_v53 }
  0xc9   :  { %v239_v32 = vmax.f32 %v197_v28, 0.0 }
  0xce   :  { %v199_v20 = vpop.f32.mrf.mxu0 }
  0xcf   :  { %v200_v22 = vadd.f32 %v760_v26, %v199_v20 }
  0xd1   :  { %v240_v25 = vmax.f32 %v200_v22, 0.0 }
  0xd3   :  { %592 = vmatmul.msk.bf16.vlgmr.msra.gmra.mxu2 %vm290_vm0, %v409_v21  ;;  %v256_v30 = vmax.f32 %v238_v27, %v240_v25 }
  0xd5   :  { %v266_v35 = vpack.c.bf16 %v256_v30, %v256_v30 }
  0xd6   :  { %v201_v29 = vpop.f32.mrf.mxu0 }
  0xd7   :  { %v202_v31 = vadd.f32 %v760_v26, %v201_v29  ;;  %v281_v42 = vunpack.c.l.b16 %v266_v35  ;;  %v626_v26 = vld [vmem:[%s817_s5 + $0x8] sm:$0xff] }
  0xd8   :  { %474 = vmatpush.bf16.msra.mxu3 %v626_v26 }
  0xd9   :  { %v241_v33 = vmax.f32 %v202_v31, 0.0 }
  0xdb   :  { %v257_v36 = vmax.f32 %v239_v32, %v241_v33 }
  0xdc   :  { %475 = vmatpush.bf16.msra.mxu3 %v625_v57 }
  0xdd   :  { %v267_v41 = vpack.c.bf16 %v257_v36, %v257_v36 }
  0xdf   :  { %v282_v43 = vunpack.c.l.b16 %v267_v41 }
  0xe1   :  { %v283_v48 = vpack.c.b16 %v282_v43, %v281_v42 }
  0xe3   :  { %566 = vmatmul.msk.bf16.vlgmr.msrb.gmra.mxu1 %vm290_vm0, %v283_v48 }
  0xf3   :  { %585 = vmatmul.msk.bf16.vlgmr.msra.gmra.mxu1 %vm290_vm0, %v376_v55 }
 0x146   :  { %v331_v56 = vpop.f32.mrf.mxu2  ;;  %v362_v61 = vpop.f32.mrf.mxu3 }
 0x14e   :  { %v333_v59 = vpop.f32.mrf.mxu2  ;;  %v364_v4 = vpop.f32.mrf.mxu3 }
 0x156   :  { %v428_v63 = vpop.f32.mrf.mxu2 }
 0x15e   :  { %v430_v10 = vpop.f32.mrf.mxu2 }
 0x160   :  { %v303_v58 = vpop.f32.mrf.mxu1 }
 0x161   :  { %v332_v62 = vadd.f32 %v331_v56, %v303_v58 }
 0x163   :  { %v367_v1 = vadd.f32 %v362_v61, %v332_v62 }
 0x168   :  { %v305_v60 = vpop.f32.mrf.mxu1 }
 0x169   :  { %v334_v2 = vadd.f32 %v333_v59, %v305_v60 }
 0x16b   :  { %v368_v7 = vadd.f32 %v364_v4, %v334_v2 }
 0x170   :  { %v395_v0 = vpop.f32.mrf.mxu1 }
 0x171   :  { %v400_v3 = vadd.f32 %v395_v0, %v367_v1 }
 0x173   :  { %v433_v5 = vadd.f32 %v428_v63, %v400_v3 }
 0x175   :  { %v439_v11 = vadd.f32 %v652_v6, %v433_v5 }
 0x177   :  { %v441_v14 = vmax.f32 %v439_v11, 0.0 }
 0x178   :  { %v397_v8 = vpop.f32.mrf.mxu1 }
 0x179   :  { %v401_v9 = vadd.f32 %v397_v8, %v368_v7 }
 0x17b   :  { %v434_v12 = vadd.f32 %v430_v10, %v401_v9 }
 0x17d   :  { %v440_v13 = vadd.f32 %v652_v6, %v434_v12 }
 0x17f   :  { %v442_v15 = vmax.f32 %v440_v13, 0.0 }
 0x181   :  { %v443_v16 = vpack.c.bf16 %v442_v15, %v441_v14 }
 0x183   :  { %601 = vmatmul.msk.bf16.vlgmr.msra.gmra.mxu3 %vm464_vm1, %v443_v16 }
 0x206   :  { %v477_v18 = vpop.f32.mrf.mxu3 }
 0x207   :  { %v478_v19 = vadd.f32 %v653_v17, %v477_v18 }
 0x209   :  { %482 = vst [vmem:[%s818_s7] sm:$0xff] %v478_v19 }
 0x20e   :  { %v479_v20 = vpop.f32.mrf.mxu3 }
 0x20f   :  { %v480_v21 = vadd.f32 %v653_v17, %v479_v20 }
 0x211   :  { %483 = vst [vmem:[%s818_s7 + $0x8] sm:$0xff] %v480_v21 }

// kernel: forward.2
= control target key start
LH: loop header
LB: loop body
LE: loop exit
PB: predicated region body
PF: predicated region fallthrough
CT: control target
= control target key end

     0   :  { %s2339_s15 = smov 0   ;;  %s2341_s16 = smov 0   ;;  %s3674_s0 = inlined_call_operand.vmem [shape: bf16[256,256], index: 0, kind: input, shape index: {}]   ;;  %s3675_s1 = inlined_call_operand.vmem [shape: f32[256,128], index: 1, kind: input, shape index: {}]   ;;  %s3676_s2 = inlined_call_operand.vmem [shape: bf16[4,128,128], index: 2, kind: input, shape index: {}]   ;;  %s3677_s3 = inlined_call_operand.vmem [shape: f32[4,1,128], index: 3, kind: input, shape index: {}]   ;;  %s3678_s4 = inlined_call_operand.vmem [shape: f32[256,128], index: 4, kind: output, shape index: {}]  }
   0x1   :  { %s2343_s17 = smov 0  }
   0x2 LB: > { %s26_s18 = sadd.s32 1, %s2304_s16  ;;  %p1782_p0 = scmp.ge.s32.totalorder %s2308_s17, 1  ;;  %s2308_s17 = sphi %s2343_s17, %s14_s17   ;;  %s2304_s16 = sphi %s2341_s16, %s3680_s16   ;;  %s2300_s15 = sphi %s2339_s15, %s3679_s15  }
   0x3   : > { %p28_p1 = scmp.ge.s32.totalorder %s26_s18, 4  ;;  %p189_p2 = scmp.lt.s32.totalorder %s2308_s17, 5 }
   0x5   : > { %s3682_s18 = smov (%p28_p1, %s26_s18), 0  ;;  %p190_p3 = pnand %p1782_p0, %p189_p2 }
   0x6   : > { %p226_p4 = scmp.lt.s32.totalorder (!%p190_p3), %s2300_s15, 3  ;;  %p234_p5 = scmp.eq.s32.totalorder (!%p190_p3), %s2300_s15, 0 }
   0x7   : > { %193 = sbr.rel (%p190_p3) target bundleno = 1415 (0x587), region = 36 }
   0xc   : > { %s2362_s19 = scalar_select %p226_p4, %s2300_s15, 3  ;;  %v240_v0 = vld [vmem:[%s3675_s1] sm:$0xff] (%p234_p5)  ;;  %v241_v1 = vld [vmem:[%s3675_s1 + $0x8] sm:$0xff] (%p234_p5)  ;;  %v242_v2 = vld [vmem:[%s3675_s1 + $0x10] sm:$0xff] (%p234_p5)  ;;  %v2310_v32 = vmov (%p234_p5), 0.0  }
   0xd   : > { %239 = sbr.rel (!%p234_p5) target bundleno = 77 (0x4d), region = 40  ;;  %272 = vst [vmem:[#allocation2 + $0xb0] sm:$0xff] (%p234_p5), %v240_v0  ;;  %v243_v3 = vld [vmem:[%s3675_s1 + $0x18] sm:$0xff] (%p234_p5)  ;;  %v244_v4 = vld [vmem:[%s3675_s1 + $0x20] sm:$0xff] (%p234_p5)  ;;  %v245_v5 = vld [vmem:[%s3675_s1 + $0x28] sm:$0xff] (%p234_p5) }
   0xe   : > { %s2016_s20 = sshll.u32 %s2362_s19, 6  ;;  %s233_s23 = scalar_lea.vmem %s3677_s3, %s2362_s19  ;;  %273 = vst [vmem:[#allocation2] sm:$0xff] (%p234_p5), %v241_v1  ;;  %v246_v6 = vld [vmem:[%s3675_s1 + $0x30] sm:$0xff] (%p234_p5)  ;;  %v247_v7 = vld [vmem:[%s3675_s1 + $0x38] sm:$0xff] (%p234_p5)  ;;  %v248_v8 = vld [vmem:[%s3675_s1 + $0x40] sm:$0xff] (%p234_p5) }
   0xf   : > { %s2372_s26 = scalar_lea.vmem %s3676_s2, %s2016_s20  ;;  %274 = vst [vmem:[#allocation2 + $0xd8] sm:$0xff] (%p234_p5), %v242_v2  ;;  %v249_v9 = vld [vmem:[%s3675_s1 + $0x48] sm:$0xff] (%p234_p5)  ;;  %v250_v10 = vld [vmem:[%s3675_s1 + $0x50] sm:$0xff] (%p234_p5)  ;;  %v251_v11 = vld [vmem:[%s3675_s1 + $0x58] sm:$0xff] (%p234_p5) }
  0x10   : > { %275 = vst [vmem:[#allocation2 + $0x18] sm:$0xff] (%p234_p5), %v243_v3  ;;  %v252_v12 = vld [vmem:[%s3675_s1 + $0x60] sm:$0xff] (%p234_p5)  ;;  %v253_v13 = vld [vmem:[%s3675_s1 + $0x68] sm:$0xff] (%p234_p5)  ;;  %v254_v14 = vld [vmem:[%s3675_s1 + $0x70] sm:$0xff] (%p234_p5) }
  0x11   : > { %276 = vst [vmem:[#allocation2 + $0x50] sm:$0xff] (%p234_p5), %v244_v4  ;;  %v255_v15 = vld [vmem:[%s3675_s1 + $0x78] sm:$0xff] (%p234_p5)  ;;  %v256_v16 = vld [vmem:[%s3675_s1 + $0x80] sm:$0xff] (%p234_p5)  ;;  %v257_v17 = vld [vmem:[%s3675_s1 + $0x88] sm:$0xff] (%p234_p5) }
  0x12   : > { %277 = vst [vmem:[#allocation2 + $0x68] sm:$0xff] %v245_v5  ;;  %v258_v18 = vld [vmem:[%s3675_s1 + $0x90] sm:$0xff]  ;;  %v259_v19 = vld [vmem:[%s3675_s1 + $0x98] sm:$0xff]  ;;  %v260_v20 = vld [vmem:[%s3675_s1 + $0xa0] sm:$0xff] }
  0x13   : > { %278 = vst [vmem:[#allocation2 + $0x30] sm:$0xff] %v246_v6  ;;  %v261_v21 = vld [vmem:[%s3675_s1 + $0xa8] sm:$0xff]  ;;  %v262_v22 = vld [vmem:[%s3675_s1 + $0xb0] sm:$0xff]  ;;  %v263_v23 = vld [vmem:[%s3675_s1 + $0xb8] sm:$0xff] }
  0x14   : > { %279 = vst [vmem:[#allocation2 + $0x48] sm:$0xff] %v247_v7  ;;  %v264_v24 = vld [vmem:[%s3675_s1 + $0xc0] sm:$0xff]  ;;  %v265_v25 = vld [vmem:[%s3675_s1 + $0xc8] sm:$0xff]  ;;  %v266_v26 = vld [vmem:[%s3675_s1 + $0xd0] sm:$0xff] }
  0x15   : > { %280 = vst [vmem:[#allocation2 + $0x80] sm:$0xff] %v248_v8  ;;  %v267_v27 = vld [vmem:[%s3675_s1 + $0xd8] sm:$0xff]  ;;  %v268_v28 = vld [vmem:[%s3675_s1 + $0xe0] sm:$0xff]  ;;  %v269_v29 = vld [vmem:[%s3675_s1 + $0xe8] sm:$0xff] }
  0x16   : > { %281 = vst [vmem:[#allocation2 + $0x88] sm:$0xff] %v249_v9  ;;  %v270_v30 = vld [vmem:[%s3675_s1 + $0xf0] sm:$0xff]  ;;  %v271_v31 = vld [vmem:[%s3675_s1 + $0xf8] sm:$0xff] }
  0x17   : > { %282 = vst [vmem:[#allocation2 + $0xe8] sm:$0xff] %v250_v10 }
  0x18   : > { %283 = vst [vmem:[#allocation2 + $0xb8] sm:$0xff] %v251_v11 }
  0x19   : > { %284 = vst [vmem:[#allocation2 + $0x60] sm:$0xff] %v252_v12 }
  0x1a   : > { %285 = vst [vmem:[#allocation2 + $0xf0] sm:$0xff] %v253_v13 }
  0x1b   : > { %286 = vst [vmem:[#allocation2 + $0x8] sm:$0xff] %v254_v14 }
  0x1c   : > { %287 = vst [vmem:[#allocation2 + $0x78] sm:$0xff] %v255_v15 }
  0x1d   : > { %288 = vst [vmem:[#allocation2 + $0x38] sm:$0xff] %v256_v16 }
  0x1e   : > { %289 = vst [vmem:[#allocation2 + $0x58] sm:$0xff] %v257_v17 }
  0x1f   : > { %290 = vst [vmem:[#allocation2 + $0x40] sm:$0xff] %v258_v18 }
  0x20   : > { %291 = vst [vmem:[#allocation2 + $0xc8] sm:$0xff] %v259_v19 }
  0x21   : > { %292 = vst [vmem:[#allocation2 + $0xe0] sm:$0xff] %v260_v20 }
  0x22   : > { %293 = vst [vmem:[#allocation2 + $0x90] sm:$0xff] %v261_v21 }
  0x23   : > { %294 = vst [vmem:[#allocation2 + $0x70] sm:$0xff] %v262_v22 }
  0x24   : > { %295 = vst [vmem:[#allocation2 + $0xc0] sm:$0xff] %v263_v23 }
  0x25   : > { %296 = vst [vmem:[#allocation2 + $0xa8] sm:$0xff] %v264_v24 }
  0x26   : > { %297 = vst [vmem:[#allocation2 + $0xd0] sm:$0xff] %v265_v25 }
  0x27   : > { %298 = vst [vmem:[#allocation2 + $0x10] sm:$0xff] %v266_v26 }
  0x28   : > { %299 = vst [vmem:[#allocation2 + $0x28] sm:$0xff] %v267_v27 }
  0x29   : > { %300 = vst [vmem:[#allocation2 + $0xa0] sm:$0xff] %v268_v28 }
  0x2a   : > { %301 = vst [vmem:[#allocation2 + $0xf8] sm:$0xff] %v269_v29 }
  0x2b   : > { %302 = vst [vmem:[#allocation2 + $0x20] sm:$0xff] %v270_v30 }
  0x2c   : > { %303 = vst [vmem:[#allocation2 + $0x98] sm:$0xff] %v271_v31 }
  0x2d   : > { %304 = vst [vmem:[%s3678_s4] sm:$0xff] %v2310_v32 }
  0x2e   : > { %305 = vst [vmem:[%s3678_s4 + $0x8] sm:$0xff] %v2310_v32 }
  0x2f   : > { %306 = vst [vmem:[%s3678_s4 + $0x10] sm:$0xff] %v2310_v32 }
  0x30   : > { %307 = vst [vmem:[%s3678_s4 + $0x18] sm:$0xff] %v2310_v32 }
  0x31   : > { %308 = vst [vmem:[%s3678_s4 + $0x20] sm:$0xff] %v2310_v32 }
  0x32   : > { %309 = vst [vmem:[%s3678_s4 + $0x28] sm:$0xff] %v2310_v32 }
  0x33   : > { %310 = vst [vmem:[%s3678_s4 + $0x30] sm:$0xff] %v2310_v32 }
  0x34   : > { %311 = vst [vmem:[%s3678_s4 + $0x38] sm:$0xff] %v2310_v32 }
  0x35   : > { %312 = vst [vmem:[%s3678_s4 + $0x40] sm:$0xff] %v2310_v32 }
  0x36   : > { %313 = vst [vmem:[%s3678_s4 + $0x48] sm:$0xff] %v2310_v32 }
  0x37   : > { %314 = vst [vmem:[%s3678_s4 + $0x50] sm:$0xff] %v2310_v32 }
  0x38   : > { %315 = vst [vmem:[%s3678_s4 + $0x58] sm:$0xff] %v2310_v32 }
  0x39   : > { %316 = vst [vmem:[%s3678_s4 + $0x60] sm:$0xff] %v2310_v32 }
  0x3a   : > { %317 = vst [vmem:[%s3678_s4 + $0x68] sm:$0xff] %v2310_v32 }
  0x3b   : > { %318 = vst [vmem:[%s3678_s4 + $0x70] sm:$0xff] %v2310_v32 }
  0x3c   : > { %319 = vst [vmem:[%s3678_s4 + $0x78] sm:$0xff] %v2310_v32 }
  0x3d   : > { %320 = vst [vmem:[%s3678_s4 + $0x80] sm:$0xff] %v2310_v32 }
  0x3e   : > { %321 = vst [vmem:[%s3678_s4 + $0x88] sm:$0xff] %v2310_v32 }
  0x3f   : > { %322 = vst [vmem:[%s3678_s4 + $0x90] sm:$0xff] %v2310_v32 }
  0x40   : > { %323 = vst [vmem:[%s3678_s4 + $0x98] sm:$0xff] %v2310_v32 }
  0x41   : > { %324 = vst [vmem:[%s3678_s4 + $0xa0] sm:$0xff] %v2310_v32 }
  0x42   : > { %325 = vst [vmem:[%s3678_s4 + $0xa8] sm:$0xff] %v2310_v32 }
  0x43   : > { %326 = vst [vmem:[%s3678_s4 + $0xb0] sm:$0xff] %v2310_v32 }
  0x44   : > { %327 = vst [vmem:[%s3678_s4 + $0xb8] sm:$0xff] %v2310_v32 }
  0x45   : > { %328 = vst [vmem:[%s3678_s4 + $0xc0] sm:$0xff] %v2310_v32 }
  0x46   : > { %329 = vst [vmem:[%s3678_s4 + $0xc8] sm:$0xff] %v2310_v32 }
  0x47   : > { %330 = vst [vmem:[%s3678_s4 + $0xd0] sm:$0xff] %v2310_v32 }
  0x48   : > { %331 = vst [vmem:[%s3678_s4 + $0xd8] sm:$0xff] %v2310_v32 }
  0x49   : > { %332 = vst [vmem:[%s3678_s4 + $0xe0] sm:$0xff] %v2310_v32 }
  0x4a   : > { %333 = vst [vmem:[%s3678_s4 + $0xe8] sm:$0xff] %v2310_v32 }
  0x4b   : > { %334 = vst [vmem:[%s3678_s4 + $0xf0] sm:$0xff] %v2310_v32 }
  0x4c   : > { %335 = vst [vmem:[%s3678_s4 + $0xf8] sm:$0xff] %v2310_v32 }
  0x4d PF: > { %v2025_v33 = vld [vmem:[%s2372_s26 + $0x38] sm:$0xff]  ;;  %v2024_v34 = vld [vmem:[%s2372_s26 + $0x30] sm:$0xff]  ;;  %v2023_v35 = vld [vmem:[%s2372_s26 + $0x28] sm:$0xff]  ;;  %p2010_p6 = scmp.ne.s32.totalorder %s2300_s15, 0 }
  0x4e   : > { %451 = vmatpush.bf16.msra.mxu0 %v2025_v33  ;;  %2169 = vmatpush.bf16.msra.mxu3 %v2025_v33  ;;  %v2022_v36 = vld [vmem:[%s2372_s26 + $0x20] sm:$0xff]  ;;  %v2021_v37 = vld [vmem:[%s2372_s26 + $0x18] sm:$0xff]  ;;  %v2020_v38 = vld [vmem:[%s2372_s26 + $0x10] sm:$0xff] }
  0x4f   : > { %v2019_v39 = vld [vmem:[%s2372_s26 + $0x8] sm:$0xff]  ;;  %v2018_v40 = vld [vmem:[%s2372_s26] sm:$0xff]  ;;  %v339_v41 = vld [vmem:[#allocation2 + $0xb0] sm:$0xff] }
  0x50   : > { %v340_v42 = vld [vmem:[#allocation2] sm:$0xff]  ;;  %v363_v44 = vld [vmem:[#allocation2 + $0xa8] sm:$0xff]  ;;  %v364_v45 = vld [vmem:[#allocation2 + $0xd0] sm:$0xff] }
  0x51   : > { %v371_v43 = vpack.c.bf16 %v340_v42, %v339_v41  ;;  %v383_v46 = vpack.c.bf16 %v364_v45, %v363_v44  ;;  %v341_v47 = vld [vmem:[#allocation2 + $0xd8] sm:$0xff]  ;;  %v365_v50 = vld [vmem:[#allocation2 + $0x10] sm:$0xff]  ;;  %v366_v51 = vld [vmem:[#allocation2 + $0x28] sm:$0xff] }
  0x52   : > { %452 = vmatpush.bf16.msra.mxu0 %v2024_v34  ;;  %2170 = vmatpush.bf16.msra.mxu3 %v2024_v34  ;;  %v342_v48 = vld [vmem:[#allocation2 + $0x18] sm:$0xff]  ;;  %v384_v52 = vpack.c.bf16 %v366_v51, %v365_v50  ;;  %v367_v56 = vld [vmem:[#allocation2 + $0xa0] sm:$0xff]  ;;  %v345_v59 = vld [vmem:[#allocation2 + $0x30] sm:$0xff] }
  0x53   : > { %v372_v49 = vpack.c.bf16 %v342_v48, %v341_v47  ;;  %v343_v53 = vld [vmem:[#allocation2 + $0x50] sm:$0xff]  ;;  %v368_v57 = vld [vmem:[#allocation2 + $0xf8] sm:$0xff]  ;;  %v346_v60 = vld [vmem:[#allocation2 + $0x48] sm:$0xff] }
  0x54   : > { %v344_v54 = vld [vmem:[#allocation2 + $0x68] sm:$0xff]  ;;  %v385_v58 = vpack.c.bf16 %v368_v57, %v367_v56  ;;  %v374_v61 = vpack.c.bf16 %v346_v60, %v345_v59  ;;  %v369_v62 = vld [vmem:[#allocation2 + $0x20] sm:$0xff]  ;;  %v370_v63 = vld [vmem:[#allocation2 + $0x98] sm:$0xff] }
  0x55   : > { %v373_v55 = vpack.c.bf16 %v344_v54, %v343_v53  ;;  %v386_v0 = vpack.c.bf16 %v370_v63, %v369_v62  ;;  %v347_v1 = vld [vmem:[#allocation2 + $0x80] sm:$0xff]  ;;  %v348_v2 = vld [vmem:[#allocation2 + $0x88] sm:$0xff]  ;;  %v350_v5 = vld [vmem:[#allocation2 + $0xb8] sm:$0xff] }
  0x56   : > { %453 = vmatpush.bf16.msra.mxu0 %v2023_v35  ;;  %2171 = vmatpush.bf16.msra.mxu3 %v2023_v35  ;;  %v375_v3 = vpack.c.bf16 %v348_v2, %v347_v1  ;;  %v349_v4 = vld [vmem:[#allocation2 + $0xe8] sm:$0xff]  ;;  %v351_v7 = vld [vmem:[#allocation2 + $0x60] sm:$0xff]  ;;  %v352_v8 = vld [vmem:[#allocation2 + $0xf0] sm:$0xff] }
  0x57   : > { %v376_v6 = vpack.c.bf16 %v350_v5, %v349_v4  ;;  %v377_v9 = vpack.c.bf16 %v352_v8, %v351_v7  ;;  %v353_v10 = vld [vmem:[#allocation2 + $0x8] sm:$0xff]  ;;  %v354_v11 = vld [vmem:[#allocation2 + $0x78] sm:$0xff]  ;;  %v357_v20 = vld [vmem:[#allocation2 + $0x40] sm:$0xff] }
  0x58   : > { %v378_v12 = vpack.c.bf16 %v354_v11, %v353_v10  ;;  %v355_v13 = vld [vmem:[#allocation2 + $0x38] sm:$0xff]  ;;  %v358_v21 = vld [vmem:[#allocation2 + $0xc8] sm:$0xff]  ;;  %v359_v29 = vld [vmem:[#allocation2 + $0xe0] sm:$0xff] }
  0x59   : > { %v356_v14 = vld [vmem:[#allocation2 + $0x58] sm:$0xff]  ;;  %v380_v22 = vpack.c.bf16 %v358_v21, %v357_v20  ;;  %v360_v30 = vld [vmem:[#allocation2 + $0x90] sm:$0xff]  ;;  %v1820_v21 = vld [vmem:[%s3674_s0] sm:$0xf] }
  0x5a   : > { %454 = vmatpush.bf16.msra.mxu0 %v2022_v36  ;;  %2172 = vmatpush.bf16.msra.mxu3 %v2022_v36  ;;  %v379_v15 = vpack.c.bf16 %v356_v14, %v355_v13  ;;  %v381_v31 = vpack.c.bf16 %v360_v30, %v359_v29  ;;  %v2029_v29 = vld [vmem:[%s3674_s0 + $0x14] sm:$0xf0] }
  0x5e   : > { %455 = vmatpush.bf16.msra.mxu0 %v2021_v37  ;;  %2173 = vmatpush.bf16.msra.mxu3 %v2021_v37 }
  0x62   : > { %456 = vmatpush.bf16.msra.mxu0 %v2020_v38  ;;  %2174 = vmatpush.bf16.msra.mxu3 %v2020_v38  ;;  %v361_v38 = vld [vmem:[#allocation2 + $0x70] sm:$0xff] }
  0x66   : > { %457 = vmatpush.bf16.msra.mxu0 %v2019_v39  ;;  %2175 = vmatpush.bf16.msra.mxu3 %v2019_v39  ;;  %v362_v39 = vld [vmem:[#allocation2 + $0xc0] sm:$0xff] }
  0x6a   : > { %458 = vmatpush.bf16.msra.mxu0 %v2018_v40  ;;  %2176 = vmatpush.bf16.msra.mxu3 %v2018_v40  ;;  %v382_v40 = vpack.c.bf16 %v362_v39, %v361_v38  ;;  %v2031_v38 = vld [vmem:[%s3674_s0 + $0x24] sm:$0xf0] }
  0x6d   : > { %459 = vmatmul.bf16.vlgmr.msra.gmra.mxu0 %v371_v43  ;;  %519 = vmatmul.bf16.vlgmr.msra.gmra.mxu3 %v383_v46 }
  0x7d   : > { %464 = vmatmul.bf16.gmra.mxu0 %v372_v49  ;;  %524 = vmatmul.bf16.gmra.mxu3 %v384_v52 }
  0x8d   : > { %469 = vmatmul.bf16.gmra.mxu0 %v373_v55  ;;  %529 = vmatmul.bf16.gmra.mxu3 %v385_v58 }
  0x9d   : > { %474 = vmatmul.bf16.gmra.mxu0 %v374_v61  ;;  %534 = vmatmul.bf16.gmra.mxu3 %v386_v0 }
  0xad   : > { %479 = vmatmul.bf16.gmra.mxu0 %v375_v3 }
  0xbd   : > { %484 = vmatmul.bf16.gmra.mxu0 %v376_v6 }
  0xcd   : > { %489 = vmatmul.bf16.gmra.mxu0 %v377_v9 }
  0xdd   : > { %494 = vmatmul.bf16.gmra.mxu0 %v378_v12 }
  0xea   : > { %v460_v16 = vpop.f32.mrf.mxu0 }
  0xed   : > { %499 = vmatmul.bf16.gmra.mxu0 %v379_v15 }
  0xf0   : > { %v520_v19 = vpop.f32.mrf.mxu3 }
  0xf2   : > { %v462_v17 = vpop.f32.mrf.mxu0 }
  0xf3   : > { %v2077_v18 = vpack.c.bf16 %v462_v17, %v460_v16 }
  0xf5   : > { %2078 = vst [vmem:[#allocation3] sm:$0xff] %v2077_v18   ;;  %v1916_v18 = vld [vmem:[%s3674_s0 + $0xc0] sm:$0xf] }
  0xf8   : > { %v522_v24 = vpop.f32.mrf.mxu3 }
  0xf9   : > { %v2137_v25 = vpack.c.bf16 %v522_v24, %v520_v19  ;;  %v2051_v19 = vld [vmem:[%s3674_s0 + $0xc4] sm:$0xf0] }
  0xfa   : > { %v465_v23 = vpop.f32.mrf.mxu0  ;;  %v1917_v20 = vor.u32 %v2051_v19, %v1916_v18  ;;  %v2056_v18 = vld [vmem:[%s3674_s0 + $0xf4] sm:$0xf]  ;;  %v1942_v19 = vld [vmem:[%s3674_s0 + $0xf8] sm:$0xf0] }
  0xfb   : > { %2165 = vst [vmem:[#allocation3 + $0x10] sm:$0xff] %v2137_v25   ;;  %v1924_v25 = vld [vmem:[%s3674_s0 + $0xd0] sm:$0xf] }
  0xfc   : > { %v2058_v14 = vld [vmem:[#allocation3] sm:$0xff] }
  0xfd   : > { %504 = vmatmul.bf16.gmra.mxu0 %v380_v22  ;;  %v2027_v22 = vld [vmem:[%s3674_s0 + $0x4] sm:$0xf0] }
 0x100   : > { %v525_v28 = vpop.f32.mrf.mxu3 }
 0x102   : > { %v467_v26 = vpop.f32.mrf.mxu0  ;;  %v2070_v58 = vld [vmem:[#allocation3 + $0x10] sm:$0xff] }
 0x103   : > { %v2082_v27 = vpack.c.bf16 %v467_v26, %v465_v23  ;;  %v1821_v23 = vor.u32 %v2027_v22, %v1820_v21  ;;  %v2053_v26 = vld [vmem:[%s3674_s0 + $0xd4] sm:$0xf0]  ;;  %v1945_v22 = vor.u32 %v2056_v18, %v1942_v19 }
 0x104   : > { %v2041_v21 = vld [vmem:[%s3674_s0 + $0x74] sm:$0xf0] }
 0x105   : > { %2154 = vst [vmem:[#allocation3 + $0x48] sm:$0xff] %v2082_v27  }
 0x108   : > { %v527_v33 = vpop.f32.mrf.mxu3 }
 0x109   : > { %v2142_v34 = vpack.c.bf16 %v527_v33, %v525_v28  ;;  %v1828_v28 = vld [vmem:[%s3674_s0 + $0x10] sm:$0xf] }
 0x10a   : > { %v470_v32 = vpop.f32.mrf.mxu0 }
 0x10b   : > { %2166 = vst [vmem:[#allocation3 + $0x30] sm:$0xff] %v2142_v34  }
 0x10c   : > { %v2059_v13 = vld [vmem:[#allocation3 + $0x48] sm:$0xff] }
 0x10d   : > { %509 = vmatmul.bf16.gmra.mxu0 %v381_v31  ;;  %v1925_v31 = vor.u32 %v2053_v26, %v1924_v25  ;;  %v1862_v25 = vld [vmem:[%s3674_s0 + $0x58] sm:$0xf0] }
 0x110   : > { %v530_v37 = vpop.f32.mrf.mxu3 }
 0x112   : > { %v472_v35 = vpop.f32.mrf.mxu0  ;;  %v2071_v55 = vld [vmem:[#allocation3 + $0x30] sm:$0xff] }
 0x113   : > { %v2087_v36 = vpack.c.bf16 %v472_v35, %v470_v32  ;;  %v1829_v32 = vor.u32 %v2029_v29, %v1828_v28  ;;  %v1932_v35 = vld [vmem:[%s3674_s0 + $0xe0] sm:$0xf]  ;;  %v2043_v28 = vld [vmem:[%s3674_s0 + $0x84] sm:$0xf0] }
 0x115   : > { %2155 = vst [vmem:[#allocation3 + $0x68] sm:$0xff] %v2087_v36   ;;  %v2055_v36 = vld [vmem:[%s3674_s0 + $0xe4] sm:$0xf0] }
 0x118   : > { %v532_v42 = vpop.f32.mrf.mxu3 }
 0x119   : > { %v2147_v43 = vpack.c.bf16 %v532_v42, %v530_v37  ;;  %v1836_v37 = vld [vmem:[%s3674_s0 + $0x20] sm:$0xf]  ;;  %v2026_v42 = vld [vmem:[%s3674_s0 + $0x4] sm:$0xf] }
 0x11a   : > { %v475_v41 = vpop.f32.mrf.mxu0 }
 0x11b   : > { %2167 = vst [vmem:[#allocation3 + $0x28] sm:$0xff] %v2147_v43   ;;  %v1822_v43 = vld [vmem:[%s3674_s0 + $0x8] sm:$0xf0] }
 0x11c   : > { %v2060_v10 = vld [vmem:[#allocation3 + $0x68] sm:$0xff] }
 0x11d   : > { %514 = vmatmul.bf16.gmra.mxu0 %v382_v40  ;;  %v1933_v40 = vor.u32 %v2055_v36, %v1932_v35 }
 0x120   : > { %v535_v46 = vpop.f32.mrf.mxu3 }
 0x122   : > { %v477_v44 = vpop.f32.mrf.mxu0  ;;  %v2072_v54 = vld [vmem:[#allocation3 + $0x28] sm:$0xff] }
 0x123   : > { %v2092_v45 = vpack.c.bf16 %v477_v44, %v475_v41  ;;  %v1837_v41 = vor.u32 %v2031_v38, %v1836_v37  ;;  %v2040_v37 = vld [vmem:[%s3674_s0 + $0x74] sm:$0xf]  ;;  %v1878_v38 = vld [vmem:[%s3674_s0 + $0x78] sm:$0xf0] }
 0x125   : > { %2156 = vst [vmem:[#allocation3 + $0x78] sm:$0xff] %v2092_v45   ;;  %v1825_v45 = vor.u32 %v2026_v42, %v1822_v43  ;;  %v1881_v43 = vor.u32 %v2040_v37, %v1878_v38 }
 0x128   : > { %v537_v48 = vpop.f32.mrf.mxu3 }
 0x129   : > { %v2152_v49 = vpack.c.bf16 %v537_v48, %v535_v46  ;;  %v1940_v46 = vld [vmem:[%s3674_s0 + $0xf0] sm:$0xf] }
 0x12a   : > { %v480_v47 = vpop.f32.mrf.mxu0  ;;  %v1844_v48 = vld [vmem:[%s3674_s0 + $0x30] sm:$0xf] }
 0x12b   : > { %2168 = vst [vmem:[#allocation3 + $0x58] sm:$0xff] %v2152_v49   ;;  %v2033_v49 = vld [vmem:[%s3674_s0 + $0x34] sm:$0xf0] }
 0x12c   : > { %v2061_v9 = vld [vmem:[#allocation3 + $0x78] sm:$0xff] }
 0x132   : > { %v482_v50 = vpop.f32.mrf.mxu0  ;;  %v2073_v52 = vld [vmem:[#allocation3 + $0x58] sm:$0xff] }
 0x133   : > { %v2097_v51 = vpack.c.bf16 %v482_v50, %v480_v47  ;;  %1018 = vmatpush.bf16.msra.mxu2 %v2073_v52  ;;  %v2057_v47 = vld [vmem:[%s3674_s0 + $0xf4] sm:$0xf0] }
 0x134   : > { %v1941_v50 = vor.u32 %v2057_v47, %v1940_v46  ;;  %v2042_v47 = vld [vmem:[%s3674_s0 + $0x84] sm:$0xf] }
 0x135   : > { %2157 = vst [vmem:[#allocation3 + $0x8] sm:$0xff] %v2097_v51   ;;  %v1845_v51 = vor.u32 %v2033_v49, %v1844_v48  ;;  %v1886_v48 = vld [vmem:[%s3674_s0 + $0x88] sm:$0xf0] }
 0x137   : > { %1019 = vmatpush.bf16.msra.mxu2 %v2072_v54 }
 0x13a   : > { %v485_v53 = vpop.f32.mrf.mxu0 }
 0x13b   : > { %1020 = vmatpush.bf16.msra.mxu2 %v2071_v55 }
 0x13c   : > { %v2062_v7 = vld [vmem:[#allocation3 + $0x8] sm:$0xff] }
 0x13f   : > { %1021 = vmatpush.bf16.msra.mxu2 %v2070_v58 }
 0x142   : > { %v487_v56 = vpop.f32.mrf.mxu0 }
 0x143   : > { %v2102_v57 = vpack.c.bf16 %v487_v56, %v485_v53  ;;  %v1830_v53 = vld [vmem:[%s3674_s0 + $0x18] sm:$0xf0]  ;;  %v1918_v56 = vld [vmem:[%s3674_s0 + $0xc8] sm:$0xf0] }
 0x145   : > { %2158 = vst [vmem:[#allocation3 + $0x50] sm:$0xff] %v2102_v57   ;;  %v1852_v57 = vld [vmem:[%s3674_s0 + $0x40] sm:$0xf] }
 0x14a   : > { %v490_v59 = vpop.f32.mrf.mxu0 }
 0x14c   : > { %v2063_v6 = vld [vmem:[#allocation3 + $0x50] sm:$0xff] }
 0x152   : > { %v492_v60 = vpop.f32.mrf.mxu0 }
 0x153   : > { %v2107_v61 = vpack.c.bf16 %v492_v60, %v490_v59 }
 0x155   : > { %2159 = vst [vmem:[#allocation3 + $0x40] sm:$0xff] %v2107_v61   ;;  %v2030_v61 = vld [vmem:[%s3674_s0 + $0x24] sm:$0xf] }
 0x15a   : > { %v495_v62 = vpop.f32.mrf.mxu0 }
 0x15c   : > { %v2064_v3 = vld [vmem:[#allocation3 + $0x40] sm:$0xff] }
 0x162   : > { %v497_v63 = vpop.f32.mrf.mxu0 }
 0x163   : > { %v2112_v0 = vpack.c.bf16 %v497_v63, %v495_v62  ;;  %v1838_v62 = vld [vmem:[%s3674_s0 + $0x28] sm:$0xf0] }
 0x164   : > { %v1841_v63 = vor.u32 %v2030_v61, %v1838_v62  ;;  %v2044_v61 = vld [vmem:[%s3674_s0 + $0x94] sm:$0xf]  ;;  %v1894_v62 = vld [vmem:[%s3674_s0 + $0x98] sm:$0xf0] }
 0x165   : > { %2160 = vst [vmem:[#allocation3 + $0x38] sm:$0xff] %v2112_v0   ;;  %v2052_v0 = vld [vmem:[%s3674_s0 + $0xd4] sm:$0xf] }
 0x16a   : > { %v500_v1 = vpop.f32.mrf.mxu0 }
 0x16c   : > { %v2065_v2 = vld [vmem:[#allocation3 + $0x38] sm:$0xff] }
 0x16d   : > { %929 = vmatpush.bf16.msra.mxu1 %v2065_v2  ;;  %2177 = vmatpush.bf16.msrb.mxu3 %v2065_v2  ;;  %v1860_v2 = vld [vmem:[%s3674_s0 + $0x50] sm:$0xf] }
 0x171   : > { %930 = vmatpush.bf16.msra.mxu1 %v2064_v3  ;;  %2178 = vmatpush.bf16.msrb.mxu3 %v2064_v3  ;;  %v2037_v3 = vld [vmem:[%s3674_s0 + $0x54] sm:$0xf0] }
 0x172   : > { %v502_v4 = vpop.f32.mrf.mxu0 }
 0x173   : > { %v2117_v5 = vpack.c.bf16 %v502_v4, %v500_v1  ;;  %v1926_v1 = vld [vmem:[%s3674_s0 + $0xd8] sm:$0xf0] }
 0x174   : > { %v1929_v4 = vor.u32 %v2052_v0, %v1926_v1  ;;  %v2049_v0 = vld [vmem:[%s3674_s0 + $0xb4] sm:$0xf0] }
 0x175   : > { %2161 = vst [vmem:[#allocation3 + $0x70] sm:$0xff] %v2117_v5   ;;  %931 = vmatpush.bf16.msra.mxu1 %v2063_v6  ;;  %2179 = vmatpush.bf16.msrb.mxu3 %v2063_v6  ;;  %v1861_v5 = vor.u32 %v2037_v3, %v1860_v2  ;;  %v2032_v6 = vld [vmem:[%s3674_s0 + $0x34] sm:$0xf] }
 0x179   : > { %932 = vmatpush.bf16.msra.mxu1 %v2062_v7  ;;  %2180 = vmatpush.bf16.msrb.mxu3 %v2062_v7  ;;  %v1846_v7 = vld [vmem:[%s3674_s0 + $0x38] sm:$0xf0] }
 0x17a   : > { %v505_v8 = vpop.f32.mrf.mxu0 }
 0x17c   : > { %v2066_v44 = vld [vmem:[#allocation3 + $0x70] sm:$0xff] }
 0x17d   : > { %933 = vmatpush.bf16.msra.mxu1 %v2061_v9  ;;  %2181 = vmatpush.bf16.msrb.mxu3 %v2061_v9  ;;  %v2054_v9 = vld [vmem:[%s3674_s0 + $0xe4] sm:$0xf] }
 0x181   : > { %934 = vmatpush.bf16.msra.mxu1 %v2060_v10  ;;  %2182 = vmatpush.bf16.msrb.mxu3 %v2060_v10  ;;  %v1934_v10 = vld [vmem:[%s3674_s0 + $0xe8] sm:$0xf0] }
 0x182   : > { %v507_v11 = vpop.f32.mrf.mxu0 }
 0x183   : > { %v2122_v12 = vpack.c.bf16 %v507_v11, %v505_v8  ;;  %v1849_v8 = vor.u32 %v2032_v6, %v1846_v7  ;;  %v1868_v11 = vld [vmem:[%s3674_s0 + $0x60] sm:$0xf]  ;;  %v1897_v6 = vor.u32 %v2044_v61, %v1894_v62 }
 0x185   : > { %2162 = vst [vmem:[#allocation3 + $0x60] sm:$0xff] %v2122_v12   ;;  %935 = vmatpush.bf16.msra.mxu1 %v2059_v13  ;;  %2183 = vmatpush.bf16.msrb.mxu3 %v2059_v13  ;;  %v2039_v12 = vld [vmem:[%s3674_s0 + $0x64] sm:$0xf0]  ;;  %v1937_v13 = vor.u32 %v2054_v9, %v1934_v10 }
 0x189   : > { %936 = vmatpush.bf16.msra.mxu1 %v2058_v14  ;;  %2184 = vmatpush.bf16.msrb.mxu3 %v2058_v14  ;;  %v1869_v14 = vor.u32 %v2039_v12, %v1868_v11 }
 0x18a   : > { %v510_v15 = vpop.f32.mrf.mxu0 }
 0x18c   : > { %997 = vmatmul.bf16.vlgmr.msrb.gmra.mxu3 %v1917_v20  ;;  %937 = vmatmul.bf16.vlgmr.msra.gmra.mxu1 %v1821_v23  ;;  %v2067_v39 = vld [vmem:[#allocation3 + $0x60] sm:$0xff]  ;;  %v1876_v20 = vld [vmem:[%s3674_s0 + $0x70] sm:$0xf] }
 0x18d   : > { %2185 = vmatpush.bf16.msra.mxu3 %v2073_v52  ;;  %v2028_v52 = vld [vmem:[%s3674_s0 + $0x14] sm:$0xf]  ;;  %v1877_v23 = vor.u32 %v2041_v21, %v1876_v20 }
 0x191   : > { %2186 = vmatpush.bf16.msra.mxu3 %v2072_v54  ;;  %v1833_v54 = vor.u32 %v2028_v52, %v1830_v53  ;;  %v2755_v53 = vld [vmem:[%s233_s23] ss:$0 sm:$0xff] }
 0x192   : > { %v512_v16 = vpop.f32.mrf.mxu0 }
 0x193   : > { %v2127_v17 = vpack.c.bf16 %v512_v16, %v510_v15  ;;  %v2034_v15 = vld [vmem:[%s3674_s0 + $0x44] sm:$0xf]  ;;  %v1854_v16 = vld [vmem:[%s3674_s0 + $0x48] sm:$0xf0] }
 0x195   : > { %2187 = vmatpush.bf16.msra.mxu3 %v2071_v55  ;;  %2163 = vst [vmem:[#allocation3 + $0x18] sm:$0xff] %v2127_v17   ;;  %v2050_v55 = vld [vmem:[%s3674_s0 + $0xc4] sm:$0xf]  ;;  %v1857_v17 = vor.u32 %v2034_v15, %v1854_v16  ;;  %v1902_v16 = vld [vmem:[%s3674_s0 + $0xa8] sm:$0xf0] }
 0x196   : > { %v1921_v59 = vor.u32 %v2050_v55, %v1918_v56  ;;  %v2046_v15 = vld [vmem:[%s3674_s0 + $0xa4] sm:$0xf] }
 0x197   : > { %v1905_v21 = vor.u32 %v2046_v15, %v1902_v16 }
 0x199   : > { %2188 = vmatpush.bf16.msra.mxu3 %v2070_v58  ;;  %v2035_v58 = vld [vmem:[%s3674_s0 + $0x44] sm:$0xf0] }
 0x19a   : > { %v515_v24 = vpop.f32.mrf.mxu0  ;;  %v1853_v60 = vor.u32 %v2035_v58, %v1852_v57 }
 0x19c   : > { %1002 = vmatmul.bf16.gmra.mxu3 %v1925_v31  ;;  %942 = vmatmul.bf16.gmra.mxu1 %v1829_v32  ;;  %v2068_v34 = vld [vmem:[#allocation3 + $0x18] sm:$0xff]  ;;  %v1870_v31 = vld [vmem:[%s3674_s0 + $0x68] sm:$0xf0] }
 0x1a2   : > { %v517_v27 = vpop.f32.mrf.mxu0 }
 0x1a3   : > { %v2132_v30 = vpack.c.bf16 %v517_v27, %v515_v24  ;;  %v2036_v24 = vld [vmem:[%s3674_s0 + $0x54] sm:$0xf]  ;;  %v1884_v27 = vld [vmem:[%s3674_s0 + $0x80] sm:$0xf] }
 0x1a4   : > { %v1865_v26 = vor.u32 %v2036_v24, %v1862_v25  ;;  %v1885_v29 = vor.u32 %v2043_v28, %v1884_v27 }
 0x1a5   : > { %2164 = vst [vmem:[#allocation3 + $0x20] sm:$0xff] %v2132_v30   ;;  %v2038_v30 = vld [vmem:[%s3674_s0 + $0x64] sm:$0xf] }
 0x1ac   : > { %v2069_v33 = vld [vmem:[#allocation3 + $0x20] sm:$0xff]  ;;  %1007 = vmatmul.bf16.gmra.mxu3 %v1933_v40  ;;  %947 = vmatmul.bf16.gmra.mxu1 %v1837_v41  ;;  %v1892_v40 = vld [vmem:[%s3674_s0 + $0x90] sm:$0xf]  ;;  %v2045_v41 = vld [vmem:[%s3674_s0 + $0x94] sm:$0xf0] }
 0x1ad   : > { %1022 = vmatpush.bf16.msra.mxu2 %v2069_v33  ;;  %2189 = vmatpush.bf16.msra.mxu3 %v2069_v33  ;;  %v1873_v33 = vor.u32 %v2038_v30, %v1870_v31  ;;  %v1893_v42 = vor.u32 %v2045_v41, %v1892_v40 }
 0x1b1   : > { %1023 = vmatpush.bf16.msra.mxu2 %v2068_v34  ;;  %2190 = vmatpush.bf16.msra.mxu3 %v2068_v34 }
 0x1b5   : > { %1024 = vmatpush.bf16.msra.mxu2 %v2067_v39  ;;  %2191 = vmatpush.bf16.msra.mxu3 %v2067_v39 }
 0x1b9   : > { %1025 = vmatpush.bf16.msra.mxu2 %v2066_v44  ;;  %2192 = vmatpush.bf16.msra.mxu3 %v2066_v44 }
 0x1bc   : > { %1026 = vmatmul.bf16.vlgmr.msra.gmra.mxu2 %v1825_v45  ;;  %1012 = vmatmul.bf16.gmra.mxu3 %v1941_v50  ;;  %v1900_v50 = vld [vmem:[%s3674_s0 + $0xa0] sm:$0xf] }
 0x1bd   : > { %952 = vmatmul.bf16.gmra.mxu1 %v1845_v51  ;;  %v2047_v51 = vld [vmem:[%s3674_s0 + $0xa4] sm:$0xf0] }
 0x1be   : > { %v1901_v52 = vor.u32 %v2047_v51, %v1900_v50 }
 0x1cc   : > { %1031 = vmatmul.bf16.gmra.mxu2 %v1833_v54  ;;  %1086 = vmatmul.bf16.vlgmr.msra.gmra.mxu3 %v1921_v59  ;;  %v1889_v54 = vor.u32 %v2042_v47, %v1886_v48 }
 0x1cd   : > { %957 = vmatmul.bf16.gmra.mxu1 %v1853_v60 }
 0x1dc   : > { %1036 = vmatmul.bf16.gmra.mxu2 %v1841_v63  ;;  %1091 = vmatmul.bf16.gmra.mxu3 %v1929_v4  ;;  %v1908_v63 = vld [vmem:[%s3674_s0 + $0xb0] sm:$0xf] }
 0x1dd   : > { %962 = vmatmul.bf16.gmra.mxu1 %v1861_v5  ;;  %v1909_v2 = vor.u32 %v2049_v0, %v1908_v63 }
 0x1ec   : > { %1041 = vmatmul.bf16.gmra.mxu2 %v1849_v8  ;;  %1096 = vmatmul.bf16.gmra.mxu3 %v1937_v13 }
 0x1ed   : > { %967 = vmatmul.bf16.gmra.mxu1 %v1869_v14 }
 0x1fc   : > { %1046 = vmatmul.bf16.gmra.mxu2 %v1857_v17  ;;  %1101 = vmatmul.bf16.gmra.mxu3 %v1945_v22 }
 0x1fd   : > { %972 = vmatmul.bf16.gmra.mxu1 %v1877_v23 }
 0x209   : > { %v938_v32 = vpop.f32.mrf.mxu1 }
 0x20a   : > { %v939_v56 = vadd.f32 %v2755_v53, %v938_v32 }
 0x20c   : > { %1051 = vmatmul.bf16.gmra.mxu2 %v1865_v26 }
 0x20d   : > { %977 = vmatmul.bf16.gmra.mxu1 %v1885_v29 }
 0x20f   : > { %v2718_v34 = vpop.f32.mrf.mxu3 }
 0x210   : > { %v999_v24 = vadd.f32 %v2755_v53, %v2718_v34  ;;  %v1910_v34 = vld [vmem:[%s3674_s0 + $0xb8] sm:$0xf0] }
 0x211   : > { %v940_v35 = vpop.f32.mrf.mxu1 }
 0x212   : > { %v941_v1 = vadd.f32 %v2755_v53, %v940_v35 }
 0x217   : > { %v2720_v36 = vpop.f32.mrf.mxu3 }
 0x218   : > { %v1001_v26 = vadd.f32 %v2755_v53, %v2720_v36 }
 0x219   : > { %v943_v39 = vpop.f32.mrf.mxu1 }
 0x21a   : > { %v944_v9 = vadd.f32 %v2755_v53, %v943_v39 }
 0x21c   : > { %1056 = vmatmul.bf16.gmra.mxu2 %v1873_v33  ;;  %v2048_v33 = vld [vmem:[%s3674_s0 + $0xb4] sm:$0xf] }
 0x21d   : > { %982 = vmatmul.bf16.gmra.mxu1 %v1893_v42  ;;  %v1913_v40 = vor.u32 %v2048_v33, %v1910_v34 }
 0x21f   : > { %v2734_v44 = vpop.f32.mrf.mxu3 }
 0x220   : > { %v1004_v47 = vadd.f32 %v2755_v53, %v2734_v44 }
 0x221   : > { %v945_v45 = vpop.f32.mrf.mxu1 }
 0x222   : > { %v946_v17 = vadd.f32 %v2755_v53, %v945_v45 }
 0x227   : > { %v2736_v46 = vpop.f32.mrf.mxu3 }
 0x228   : > { %v1006_v48 = vadd.f32 %v2755_v53, %v2736_v46 }
 0x229   : > { %v948_v49 = vpop.f32.mrf.mxu1 }
 0x22a   : > { %v949_v23 = vadd.f32 %v2755_v53, %v948_v49 }
 0x22c   : > { %1061 = vmatmul.bf16.gmra.mxu2 %v1881_v43 }
 0x22d   : > { %987 = vmatmul.bf16.gmra.mxu1 %v1901_v52 }
 0x22f   : > { %v2757_v55 = vpop.f32.mrf.mxu3 }
 0x231   : > { %v950_v58 = vpop.f32.mrf.mxu1 }
 0x232   : > { %v951_v35 = vadd.f32 %v2755_v53, %v950_v58 }
 0x237   : > { %v2760_v60 = vpop.f32.mrf.mxu3 }
 0x23a   : > { %v953_v7 = vpop.f32.mrf.mxu1 }
 0x23b   : > { %v954_v45 = vadd.f32 %v2755_v53, %v953_v7 }
 0x23c   : > { %1066 = vmatmul.bf16.gmra.mxu2 %v1889_v54 }
 0x23d   : > { %992 = vmatmul.bf16.gmra.mxu1 %v1909_v2  ;;  %v1009_v2 = vadd.f32 %v2755_v53, %v2757_v55 }
 0x23f   : > { %v1027_v57 = vpop.f32.mrf.mxu2  ;;  %v2778_v8 = vpop.f32.mrf.mxu3 }
 0x240   : > { %v1028_v59 = vadd.f32 %v1027_v57, %v939_v56 }
 0x242   : > { %2222 = vtanh.f32 %v1028_v59  ;;  %v955_v14 = vpop.f32.mrf.mxu1 }
 0x243   : > { %v956_v58 = vadd.f32 %v2755_v53, %v955_v14 }
 0x247   : > { %v1029_v3 = vpop.f32.mrf.mxu2  ;;  %v2784_v13 = vpop.f32.mrf.mxu3 }
 0x248   : > { %v2775_v4 = vpop.eup %2222  ;;  %v1030_v5 = vadd.f32 %v1029_v3, %v941_v1  ;;  %v1011_v3 = vadd.f32 %v2755_v53, %v2760_v60 }
 0x249   : > { %1140 = vst [vmem:[#allocation2 + $0xb0] sm:$0xff] %v2775_v4 }
 0x24a   : > { %2224 = vtanh.f32 %v1030_v5  ;;  %v958_v25 = vpop.f32.mrf.mxu1 }
 0x24b   : > { %v959_v1 = vadd.f32 %v2755_v53, %v958_v25 }
 0x24c   : > { %1071 = vmatmul.bf16.gmra.mxu2 %v1897_v6 }
 0x24f   : > { %v1032_v10 = vpop.f32.mrf.mxu2  ;;  %v1087_v22 = vpop.f32.mrf.mxu3 }
 0x250   : > { %v2781_v11 = vpop.eup %2224  ;;  %v1033_v12 = vadd.f32 %v1032_v10, %v944_v9  ;;  %v1088_v30 = vadd.f32 %v1087_v22, %v999_v24  ;;  %v1014_v22 = vadd.f32 %v2755_v53, %v2778_v8 }
 0x251   : > { %1141 = vst [vmem:[#allocation2] sm:$0xff] %v2781_v11 }
 0x252   : > { %2226 = vtanh.f32 %v1033_v12  ;;  %v960_v37 = vpop.f32.mrf.mxu1 }
 0x253   : > { %v961_v15 = vadd.f32 %v2755_v53, %v960_v37 }
 0x257   : > { %v1034_v18 = vpop.f32.mrf.mxu2  ;;  %v1089_v31 = vpop.f32.mrf.mxu3 }
 0x258   : > { %v2793_v19 = vpop.eup %2226  ;;  %v1035_v20 = vadd.f32 %v1034_v18, %v946_v17  ;;  %v1090_v32 = vadd.f32 %v1089_v31, %v1001_v26 }
 0x259   : > { %1142 = vst [vmem:[#allocation2 + $0xd8] sm:$0xff] %v2793_v19 }
 0x25a   : > { %2228 = vtanh.f32 %v1035_v20  ;;  %v963_v52 = vpop.f32.mrf.mxu1 }
 0x25c   : > { %1076 = vmatmul.bf16.gmra.mxu2 %v1905_v21  ;;  %v964_v21 = vadd.f32 %v2755_v53, %v963_v52 }
 0x25f   : > { %v1037_v27 = vpop.f32.mrf.mxu2  ;;  %v1092_v42 = vpop.f32.mrf.mxu3 }
 0x260   : > { %v2801_v28 = vpop.eup %2228  ;;  %v1038_v29 = vadd.f32 %v1037_v27, %v949_v23  ;;  %v1093_v54 = vadd.f32 %v1092_v42, %v1004_v47  ;;  %v1016_v23 = vadd.f32 %v2755_v53, %v2784_v13 }
 0x261   : > { %1143 = vst [vmem:[#allocation2 + $0x18] sm:$0xff] %v2801_v28 }
 0x262   : > { %2230 = vtanh.f32 %v1038_v29  ;;  %v965_v0 = vpop.f32.mrf.mxu1 }
 0x263   : > { %2232 = vtanh.f32 %v1088_v30 }
 0x264   : > { %2234 = vtanh.f32 %v1090_v32  ;;  %v966_v32 = vadd.f32 %v2755_v53, %v965_v0 }
 0x267   : > { %v1039_v36 = vpop.f32.mrf.mxu2  ;;  %v1094_v56 = vpop.f32.mrf.mxu3 }
 0x268   : > { %v2811_v38 = vpop.eup %2230  ;;  %v1040_v39 = vadd.f32 %v1039_v36, %v951_v35  ;;  %v1095_v57 = vadd.f32 %v1094_v56, %v1006_v48 }
 0x269   : > { %v2813_v41 = vpop.eup %2232  ;;  %1144 = vst [vmem:[#allocation2 + $0x50] sm:$0xff] %v2811_v38 }
 0x26a   : > { %2236 = vtanh.f32 %v1040_v39  ;;  %1164 = vst [vmem:[#allocation2 + $0xa8] sm:$0xff] %v2813_v41  ;;  %v2817_v43 = vpop.eup %2234  ;;  %v968_v14 = vpop.f32.mrf.mxu1 }
 0x26b   : > { %1165 = vst [vmem:[#allocation2 + $0xd0] sm:$0xff] %v2817_v43  ;;  %v969_v37 = vadd.f32 %v2755_v53, %v968_v14 }
 0x26c   : > { %1081 = vmatmul.bf16.gmra.mxu2 %v1913_v40 }
 0x26f   : > { %v1042_v49 = vpop.f32.mrf.mxu2  ;;  %v1097_v62 = vpop.f32.mrf.mxu3 }
 0x270   : > { %v2825_v50 = vpop.eup %2236  ;;  %v1043_v51 = vadd.f32 %v1042_v49, %v954_v45  ;;  %v1098_v9 = vadd.f32 %v1097_v62, %v1009_v2 }
 0x271   : > { %1145 = vst [vmem:[#allocation2 + $0x68] sm:$0xff] %v2825_v50 }
 0x272   : > { %2238 = vtanh.f32 %v1043_v51  ;;  %v970_v25 = vpop.f32.mrf.mxu1 }
 0x273   : > { %2240 = vtanh.f32 %v1093_v54  ;;  %v971_v47 = vadd.f32 %v2755_v53, %v970_v25 }
 0x274   : > { %2242 = vtanh.f32 %v1095_v57 }
 0x277   : > { %v1044_v59 = vpop.f32.mrf.mxu2  ;;  %v1099_v10 = vpop.f32.mrf.mxu3 }
 0x278   : > { %v2829_v44 = vpop.eup %2238  ;;  %v1045_v61 = vadd.f32 %v1044_v59, %v956_v58  ;;  %v1100_v12 = vadd.f32 %v1099_v10, %v1011_v3 }
 0x279   : > { %v2831_v46 = vpop.eup %2240  ;;  %1146 = vst [vmem:[#allocation2 + $0x30] sm:$0xff] %v2829_v44 }
 0x27a   : > { %2244 = vtanh.f32 %v1045_v61  ;;  %1166 = vst [vmem:[#allocation2 + $0x10] sm:$0xff] %v2831_v46  ;;  %v2835_v63 = vpop.eup %2242  ;;  %v973_v35 = vpop.f32.mrf.mxu1 }
 0x27b   : > { %1167 = vst [vmem:[#allocation2 + $0x28] sm:$0xff] %v2835_v63  ;;  %v974_v52 = vadd.f32 %v2755_v53, %v973_v35 }
 0x27f   : > { %v1047_v5 = vpop.f32.mrf.mxu2  ;;  %v1102_v18 = vpop.f32.mrf.mxu3 }
 0x280   : > { %v2843_v6 = vpop.eup %2244  ;;  %v1048_v7 = vadd.f32 %v1047_v5, %v959_v1  ;;  %v1103_v29 = vadd.f32 %v1102_v18, %v1014_v22 }
 0x281   : > { %1147 = vst [vmem:[#allocation2 + $0x48] sm:$0xff] %v2843_v6 }
 0x282   : > { %2246 = vtanh.f32 %v1048_v7  ;;  %v975_v45 = vpop.f32.mrf.mxu1 }
 0x283   : > { %2248 = vtanh.f32 %v1098_v9  ;;  %v976_v59 = vadd.f32 %v2755_v53, %v975_v45 }
 0x284   : > { %2250 = vtanh.f32 %v1100_v12 }
 0x287   : > { %v1049_v16 = vpop.f32.mrf.mxu2  ;;  %v1104_v30 = vpop.f32.mrf.mxu3 }
 0x288   : > { %v2847_v55 = vpop.eup %2246  ;;  %v1050_v17 = vadd.f32 %v1049_v16, %v961_v15  ;;  %v1105_v31 = vadd.f32 %v1104_v30, %v1016_v23 }
 0x289   : > { %v2849_v60 = vpop.eup %2248  ;;  %1148 = vst [vmem:[#allocation2 + $0x80] sm:$0xff] %v2847_v55 }
 0x28a   : > { %2252 = vtanh.f32 %v1050_v17  ;;  %1168 = vst [vmem:[#allocation2 + $0xa0] sm:$0xff] %v2849_v60  ;;  %v2853_v20 = vpop.eup %2250  ;;  %v978_v54 = vpop.f32.mrf.mxu1 }
 0x28b   : > { %1169 = vst [vmem:[#allocation2 + $0xf8] sm:$0xff] %v2853_v20  ;;  %v979_v2 = vadd.f32 %v2755_v53, %v978_v54 }
 0x28f   : > { %v1052_v24 = vpop.f32.mrf.mxu2 }
 0x290   : > { %v2861_v26 = vpop.eup %2252  ;;  %v1053_v27 = vadd.f32 %v1052_v24, %v964_v21 }
 0x291   : > { %1149 = vst [vmem:[#allocation2 + $0x88] sm:$0xff] %v2861_v26 }
 0x292   : > { %2254 = vtanh.f32 %v1053_v27  ;;  %v980_v62 = vpop.f32.mrf.mxu1 }
 0x293   : > { %2256 = vtanh.f32 %v1103_v29  ;;  %v981_v10 = vadd.f32 %v2755_v53, %v980_v62 }
 0x294   : > { %2258 = vtanh.f32 %v1105_v31 }
 0x297   : > { %v1054_v33 = vpop.f32.mrf.mxu2 }
 0x298   : > { %v2865_v8 = vpop.eup %2254  ;;  %v1055_v34 = vadd.f32 %v1054_v33, %v966_v32 }
 0x299   : > { %v2867_v13 = vpop.eup %2256  ;;  %1150 = vst [vmem:[#allocation2 + $0xe8] sm:$0xff] %v2865_v8 }
 0x29a   : > { %2260 = vtanh.f32 %v1055_v34  ;;  %1170 = vst [vmem:[#allocation2 + $0x20] sm:$0xff] %v2867_v13  ;;  %v2871_v36 = vpop.eup %2258  ;;  %v983_v9 = vpop.f32.mrf.mxu1 }
 0x29b   : > { %1171 = vst [vmem:[#allocation2 + $0x98] sm:$0xff] %v2871_v36  ;;  %v984_v17 = vadd.f32 %v2755_v53, %v983_v9 }
 0x29f   : > { %v1057_v39 = vpop.f32.mrf.mxu2 }
 0x2a0   : > { %v2875_v40 = vpop.eup %2260  ;;  %v1058_v42 = vadd.f32 %v1057_v39, %v969_v37 }
 0x2a1   : > { %1151 = vst [vmem:[#allocation2 + $0xb8] sm:$0xff] %v2875_v40 }
 0x2a2   : > { %2262 = vtanh.f32 %v1058_v42  ;;  %v985_v16 = vpop.f32.mrf.mxu1 }
 0x2a3   : > { %v986_v24 = vadd.f32 %v2755_v53, %v985_v16 }
 0x2a7   : > { %v1059_v48 = vpop.f32.mrf.mxu2 }
 0x2a8   : > { %v2879_v49 = vpop.eup %2262  ;;  %v1060_v51 = vadd.f32 %v1059_v48, %v971_v47 }
 0x2a9   : > { %1152 = vst [vmem:[#allocation2 + $0x60] sm:$0xff] %v2879_v49 }
 0x2aa   : > { %2264 = vtanh.f32 %v1060_v51  ;;  %v988_v23 = vpop.f32.mrf.mxu1 }
 0x2ab   : > { %v989_v30 = vadd.f32 %v2755_v53, %v988_v23 }
 0x2af   : > { %v1062_v56 = vpop.f32.mrf.mxu2 }
 0x2b0   : > { %v2883_v57 = vpop.eup %2264  ;;  %v1063_v58 = vadd.f32 %v1062_v56, %v974_v52 }
 0x2b1   : > { %1153 = vst [vmem:[#allocation2 + $0xf0] sm:$0xff] %v2883_v57 }
 0x2b2   : > { %2266 = vtanh.f32 %v1063_v58  ;;  %v990_v31 = vpop.f32.mrf.mxu1 }
 0x2b3   : > { %v991_v35 = vadd.f32 %v2755_v53, %v990_v31 }
 0x2b7   : > { %v1064_v61 = vpop.f32.mrf.mxu2 }
 0x2b8   : > { %v2887_v0 = vpop.eup %2266  ;;  %v1065_v1 = vadd.f32 %v1064_v61, %v976_v59 }
 0x2b9   : > { %1154 = vst [vmem:[#allocation2 + $0x8] sm:$0xff] %v2887_v0 }
 0x2ba   : > { %2268 = vtanh.f32 %v1065_v1  ;;  %v993_v45 = vpop.f32.mrf.mxu1 }
 0x2bb   : > { %v994_v47 = vadd.f32 %v2755_v53, %v993_v45 }
 0x2bf   : > { %v1067_v3 = vpop.f32.mrf.mxu2 }
 0x2c0   : > { %v2891_v5 = vpop.eup %2268  ;;  %v1068_v7 = vadd.f32 %v1067_v3, %v979_v2 }
 0x2c1   : > { %1155 = vst [vmem:[#allocation2 + $0x78] sm:$0xff] %v2891_v5 }
 0x2c2   : > { %2270 = vtanh.f32 %v1068_v7  ;;  %v995_v54 = vpop.f32.mrf.mxu1 }
 0x2c3   : > { %v996_v56 = vadd.f32 %v2755_v53, %v995_v54 }
 0x2c7   : > { %v1069_v12 = vpop.f32.mrf.mxu2 }
 0x2c8   : > { %v2895_v14 = vpop.eup %2270  ;;  %v1070_v15 = vadd.f32 %v1069_v12, %v981_v10 }
 0x2c9   : > { %1156 = vst [vmem:[#allocation2 + $0x38] sm:$0xff] %v2895_v14 }
 0x2ca   : > { %2272 = vtanh.f32 %v1070_v15 }
 0x2cf   : > { %v1072_v18 = vpop.f32.mrf.mxu2 }
 0x2d0   : > { %v2899_v21 = vpop.eup %2272  ;;  %v1073_v22 = vadd.f32 %v1072_v18, %v984_v17 }
 0x2d1   : > { %1157 = vst [vmem:[#allocation2 + $0x58] sm:$0xff] %v2899_v21 }
 0x2d2   : > { %2274 = vtanh.f32 %v1073_v22 }
 0x2d7   : > { %v1074_v25 = vpop.f32.mrf.mxu2 }
 0x2d8   : > { %v2903_v27 = vpop.eup %2274  ;;  %v1075_v29 = vadd.f32 %v1074_v25, %v986_v24 }
 0x2d9   : > { %1158 = vst [vmem:[#allocation2 + $0x40] sm:$0xff] %v2903_v27 }
 0x2da   : > { %2276 = vtanh.f32 %v1075_v29 }
 0x2df   : > { %v1077_v32 = vpop.f32.mrf.mxu2 }
 0x2e0   : > { %v2907_v33 = vpop.eup %2276  ;;  %v1078_v34 = vadd.f32 %v1077_v32, %v989_v30 }
 0x2e1   : > { %1159 = vst [vmem:[#allocation2 + $0xc8] sm:$0xff] %v2907_v33 }
 0x2e2   : > { %2278 = vtanh.f32 %v1078_v34 }
 0x2e7   : > { %v1079_v37 = vpop.f32.mrf.mxu2 }
 0x2e8   : > { %v2911_v39 = vpop.eup %2278  ;;  %v1080_v42 = vadd.f32 %v1079_v37, %v991_v35 }
 0x2e9   : > { %1160 = vst [vmem:[#allocation2 + $0xe0] sm:$0xff] %v2911_v39 }
 0x2ea   : > { %2280 = vtanh.f32 %v1080_v42 }
 0x2ef   : > { %v1082_v48 = vpop.f32.mrf.mxu2 }
 0x2f0   : > { %v2915_v51 = vpop.eup %2280  ;;  %v1083_v52 = vadd.f32 %v1082_v48, %v994_v47 }
 0x2f1   : > { %1161 = vst [vmem:[#allocation2 + $0x90] sm:$0xff] %v2915_v51 }
 0x2f2   : > { %2282 = vtanh.f32 %v1083_v52 }
 0x2f7   : > { %v1084_v58 = vpop.f32.mrf.mxu2 }
 0x2f8   : > { %v2919_v59 = vpop.eup %2282  ;;  %v1085_v61 = vadd.f32 %v1084_v58, %v996_v56 }
 0x2f9   : > { %1162 = vst [vmem:[#allocation2 + $0x70] sm:$0xff] %v2919_v59 }
 0x2fa   : > { %2284 = vtanh.f32 %v1085_v61 }
 0x2fd   : > { %1174 = sbr.rel (%p2010_p6) target bundleno = 803 (0x323), region = 48 }
 0x300   : > { %v2922_v62 = vpop.eup %2284 }
 0x301   : > { %1163 = vst [vmem:[#allocation2 + $0xc0] sm:$0xff] %v2922_v62 }
 0x302   : > { %vm1176_vm0 = vcmask 64512  }
 0x303   : > { %1177 = vst.msk [vmem:[%s3678_s4] sm:$0xff] %vm1176_vm0, %v2775_v4 }
 0x304   : > { %1178 = vst.msk [vmem:[%s3678_s4 + $0x8] sm:$0xff] %vm1176_vm0, %v2781_v11 }
 0x305   : > { %1179 = vst.msk [vmem:[%s3678_s4 + $0x10] sm:$0xff] %vm1176_vm0, %v2793_v19 }
 0x306   : > { %1180 = vst.msk [vmem:[%s3678_s4 + $0x18] sm:$0xff] %vm1176_vm0, %v2801_v28 }
 0x307   : > { %1181 = vst.msk [vmem:[%s3678_s4 + $0x20] sm:$0xff] %vm1176_vm0, %v2811_v38 }
 0x308   : > { %1182 = vst.msk [vmem:[%s3678_s4 + $0x28] sm:$0xff] %vm1176_vm0, %v2825_v50 }
 0x309   : > { %1183 = vst.msk [vmem:[%s3678_s4 + $0x30] sm:$0xff] %vm1176_vm0, %v2829_v44 }
 0x30a   : > { %1184 = vst.msk [vmem:[%s3678_s4 + $0x38] sm:$0xff] %vm1176_vm0, %v2843_v6 }
 0x30b   : > { %1185 = vst.msk [vmem:[%s3678_s4 + $0x40] sm:$0xff] %vm1176_vm0, %v2847_v55 }
 0x30c   : > { %1186 = vst.msk [vmem:[%s3678_s4 + $0x48] sm:$0xff] %vm1176_vm0, %v2861_v26 }
 0x30d   : > { %1187 = vst.msk [vmem:[%s3678_s4 + $0x50] sm:$0xff] %vm1176_vm0, %v2865_v8 }
 0x30e   : > { %1188 = vst.msk [vmem:[%s3678_s4 + $0x58] sm:$0xff] %vm1176_vm0, %v2875_v40 }
 0x30f   : > { %1189 = vst.msk [vmem:[%s3678_s4 + $0x60] sm:$0xff] %vm1176_vm0, %v2879_v49 }
 0x310   : > { %1190 = vst.msk [vmem:[%s3678_s4 + $0x68] sm:$0xff] %vm1176_vm0, %v2883_v57 }
 0x311   : > { %1191 = vst.msk [vmem:[%s3678_s4 + $0x70] sm:$0xff] %vm1176_vm0, %v2887_v0 }
 0x312   : > { %1192 = vst.msk [vmem:[%s3678_s4 + $0x78] sm:$0xff] %vm1176_vm0, %v2891_v5 }
 0x313   : > { %1193 = vst.msk [vmem:[%s3678_s4 + $0x80] sm:$0xff] %vm1176_vm0, %v2895_v14 }
 0x314   : > { %1194 = vst.msk [vmem:[%s3678_s4 + $0x88] sm:$0xff] %vm1176_vm0, %v2899_v21 }
 0x315   : > { %1195 = vst.msk [vmem:[%s3678_s4 + $0x90] sm:$0xff] %vm1176_vm0, %v2903_v27 }
 0x316   : > { %1196 = vst.msk [vmem:[%s3678_s4 + $0x98] sm:$0xff] %vm1176_vm0, %v2907_v33 }
 0x317   : > { %1197 = vst.msk [vmem:[%s3678_s4 + $0xa0] sm:$0xff] %vm1176_vm0, %v2911_v39 }
 0x318   : > { %1198 = vst.msk [vmem:[%s3678_s4 + $0xa8] sm:$0xff] %vm1176_vm0, %v2915_v51 }
 0x319   : > { %1199 = vst.msk [vmem:[%s3678_s4 + $0xb0] sm:$0xff] %vm1176_vm0, %v2919_v59 }
 0x31a   : > { %1200 = vst.msk [vmem:[%s3678_s4 + $0xb8] sm:$0xff] %vm1176_vm0, %v2922_v62 }
 0x31b   : > { %1201 = vst.msk [vmem:[%s3678_s4 + $0xc0] sm:$0xff] %vm1176_vm0, %v2813_v41 }
 0x31c   : > { %1202 = vst.msk [vmem:[%s3678_s4 + $0xc8] sm:$0xff] %vm1176_vm0, %v2817_v43 }
 0x31d   : > { %1203 = vst.msk [vmem:[%s3678_s4 + $0xd0] sm:$0xff] %vm1176_vm0, %v2831_v46 }
 0x31e   : > { %1204 = vst.msk [vmem:[%s3678_s4 + $0xd8] sm:$0xff] %vm1176_vm0, %v2835_v63 }
 0x31f   : > { %1205 = vst.msk [vmem:[%s3678_s4 + $0xe0] sm:$0xff] %vm1176_vm0, %v2849_v60 }
 0x320   : > { %1206 = vst.msk [vmem:[%s3678_s4 + $0xe8] sm:$0xff] %vm1176_vm0, %v2853_v20 }
 0x321   : > { %1207 = vst.msk [vmem:[%s3678_s4 + $0xf0] sm:$0xff] %vm1176_vm0, %v2867_v13 }
 0x322   : > { %1208 = vst.msk [vmem:[%s3678_s4 + $0xf8] sm:$0xff] %vm1176_vm0, %v2871_v36 }
 0x323 PF: > { %p2011_p7 = scmp.ne.s32.totalorder %s2300_s15, 1 }
 0x324   : > { %s2311_s27 = smov (!%p2011_p7), 8  }
 0x325   : > { %1212 = sbr.rel (%p2011_p7) target bundleno = 1007 (0x3ef), region = 52 }
 0x32a   : > { %1249 = vrot.lane.b32.xlu1 %v2793_v19, %s2311_s27  ;;  %1245 = vrot.lane.b32.xlu0 %v2775_v4, %s2311_s27  ;;  %vm1342_vm1 = vcmask 130112  }
 0x32b   : > { %1253 = vrot.lane.b32.xlu2 %v2811_v38, %s2311_s27 }
 0x332   : > { %1251 = vrot.lane.b32.xlu1 %v2801_v28, %s2311_s27  ;;  %1247 = vrot.lane.b32.xlu0 %v2781_v11, %s2311_s27 }
 0x333   : > { %1255 = vrot.lane.b32.xlu2 %v2825_v50, %s2311_s27 }
 0x33a   : > { %1259 = vrot.lane.b32.xlu1 %v2843_v6, %s2311_s27  ;;  %1257 = vrot.lane.b32.xlu0 %v2829_v44, %s2311_s27 }
 0x33b   : > { %1261 = vrot.lane.b32.xlu2 %v2847_v55, %s2311_s27 }
 0x342   : > { %1265 = vrot.lane.b32.xlu1 %v2865_v8, %s2311_s27  ;;  %1263 = vrot.lane.b32.xlu0 %v2861_v26, %s2311_s27 }
 0x343   : > { %1267 = vrot.lane.b32.xlu2 %v2875_v40, %s2311_s27 }
 0x34a   : > { %1271 = vrot.lane.b32.xlu1 %v2883_v57, %s2311_s27  ;;  %1269 = vrot.lane.b32.xlu0 %v2879_v49, %s2311_s27 }
 0x34b   : > { %1273 = vrot.lane.b32.xlu2 %v2887_v0, %s2311_s27 }
 0x352   : > { %1277 = vrot.lane.b32.xlu1 %v2895_v14, %s2311_s27  ;;  %1275 = vrot.lane.b32.xlu0 %v2891_v5, %s2311_s27 }
 0x353   : > { %1279 = vrot.lane.b32.xlu2 %v2899_v21, %s2311_s27 }
 0x35a   : > { %1283 = vrot.lane.b32.xlu1 %v2907_v33, %s2311_s27  ;;  %1281 = vrot.lane.b32.xlu0 %v2903_v27, %s2311_s27 }
 0x35b   : > { %1285 = vrot.lane.b32.xlu2 %v2911_v39, %s2311_s27 }
 0x362   : > { %1289 = vrot.lane.b32.xlu1 %v2919_v59, %s2311_s27  ;;  %1287 = vrot.lane.b32.xlu0 %v2915_v51, %s2311_s27 }
 0x363   : > { %1291 = vrot.lane.b32.xlu2 %v2922_v62, %s2311_s27 }
 0x36a   : > { %1295 = vrot.lane.b32.xlu1 %v2817_v43, %s2311_s27  ;;  %1293 = vrot.lane.b32.xlu0 %v2813_v41, %s2311_s27 }
 0x36b   : > { %1297 = vrot.lane.b32.xlu2 %v2831_v46, %s2311_s27 }
 0x372   : > { %1301 = vrot.lane.b32.xlu1 %v2849_v60, %s2311_s27  ;;  %1299 = vrot.lane.b32.xlu0 %v2835_v63, %s2311_s27 }
 0x373   : > { %1303 = vrot.lane.b32.xlu2 %v2853_v20, %s2311_s27 }
 0x37a   : > { %1307 = vrot.lane.b32.xlu1 %v2871_v36, %s2311_s27  ;;  %1305 = vrot.lane.b32.xlu0 %v2867_v13, %s2311_s27 }
 0x385   : > { %v1254_v53 = vpop.permute.xlu2 %1253 }
 0x386   : > { %1347 = vst.msk [vmem:[%s3678_s4 + $0x20] sm:$0xff] %vm1342_vm1, %v1254_v53 }
 0x38d   : > { %v1256_v1 = vpop.permute.xlu2 %1255 }
 0x38e   : > { %1348 = vst.msk [vmem:[%s3678_s4 + $0x28] sm:$0xff] %vm1342_vm1, %v1256_v1 }
 0x395   : > { %v1262_v2 = vpop.permute.xlu2 %1261 }
 0x396   : > { %1351 = vst.msk [vmem:[%s3678_s4 + $0x40] sm:$0xff] %vm1342_vm1, %v1262_v2 }
 0x39c   : > { %v1250_v3 = vpop.permute.xlu1 %1249  ;;  %v1246_v7 = vpop.permute.xlu0 %1245 }
 0x39d   : > { %1345 = vst.msk [vmem:[%s3678_s4 + $0x10] sm:$0xff] %vm1342_vm1, %v1250_v3  ;;  %v1268_v9 = vpop.permute.xlu2 %1267 }
 0x39e   : > { %1343 = vst.msk [vmem:[%s3678_s4] sm:$0xff] %vm1342_vm1, %v1246_v7 }
 0x39f   : > { %1354 = vst.msk [vmem:[%s3678_s4 + $0x58] sm:$0xff] %vm1342_vm1, %v1268_v9 }
 0x3a4   : > { %v1252_v10 = vpop.permute.xlu1 %1251  ;;  %v1248_v12 = vpop.permute.xlu0 %1247 }
 0x3a5   : > { %1346 = vst.msk [vmem:[%s3678_s4 + $0x18] sm:$0xff] %vm1342_vm1, %v1252_v10  ;;  %v1274_v15 = vpop.permute.xlu2 %1273 }
 0x3a6   : > { %1344 = vst.msk [vmem:[%s3678_s4 + $0x8] sm:$0xff] %vm1342_vm1, %v1248_v12 }
 0x3a7   : > { %1357 = vst.msk [vmem:[%s3678_s4 + $0x70] sm:$0xff] %vm1342_vm1, %v1274_v15 }
 0x3ac   : > { %v1260_v16 = vpop.permute.xlu1 %1259  ;;  %v1258_v17 = vpop.permute.xlu0 %1257 }
 0x3ad   : > { %1350 = vst.msk [vmem:[%s3678_s4 + $0x38] sm:$0xff] %vm1342_vm1, %v1260_v16  ;;  %v1280_v18 = vpop.permute.xlu2 %1279 }
 0x3ae   : > { %1349 = vst.msk [vmem:[%s3678_s4 + $0x30] sm:$0xff] %vm1342_vm1, %v1258_v17 }
 0x3af   : > { %1360 = vst.msk [vmem:[%s3678_s4 + $0x88] sm:$0xff] %vm1342_vm1, %v1280_v18 }
 0x3b4   : > { %v1266_v22 = vpop.permute.xlu1 %1265  ;;  %v1264_v23 = vpop.permute.xlu0 %1263 }
 0x3b5   : > { %1353 = vst.msk [vmem:[%s3678_s4 + $0x50] sm:$0xff] %vm1342_vm1, %v1266_v22  ;;  %v1286_v24 = vpop.permute.xlu2 %1285 }
 0x3b6   : > { %1352 = vst.msk [vmem:[%s3678_s4 + $0x48] sm:$0xff] %vm1342_vm1, %v1264_v23 }
 0x3b7   : > { %1363 = vst.msk [vmem:[%s3678_s4 + $0xa0] sm:$0xff] %vm1342_vm1, %v1286_v24 }
 0x3bc   : > { %v1272_v25 = vpop.permute.xlu1 %1271  ;;  %v1270_v29 = vpop.permute.xlu0 %1269 }
 0x3bd   : > { %1356 = vst.msk [vmem:[%s3678_s4 + $0x68] sm:$0xff] %vm1342_vm1, %v1272_v25  ;;  %v1292_v30 = vpop.permute.xlu2 %1291 }
 0x3be   : > { %1355 = vst.msk [vmem:[%s3678_s4 + $0x60] sm:$0xff] %vm1342_vm1, %v1270_v29 }
 0x3bf   : > { %1366 = vst.msk [vmem:[%s3678_s4 + $0xb8] sm:$0xff] %vm1342_vm1, %v1292_v30 }
 0x3c4   : > { %v1278_v31 = vpop.permute.xlu1 %1277  ;;  %v1276_v32 = vpop.permute.xlu0 %1275 }
 0x3c5   : > { %1359 = vst.msk [vmem:[%s3678_s4 + $0x80] sm:$0xff] %vm1342_vm1, %v1278_v31  ;;  %v1298_v34 = vpop.permute.xlu2 %1297 }
 0x3c6   : > { %1358 = vst.msk [vmem:[%s3678_s4 + $0x78] sm:$0xff] %vm1342_vm1, %v1276_v32 }
 0x3c7   : > { %1369 = vst.msk [vmem:[%s3678_s4 + $0xd0] sm:$0xff] %vm1342_vm1, %v1298_v34 }
 0x3cc   : > { %v1284_v35 = vpop.permute.xlu1 %1283  ;;  %v1282_v37 = vpop.permute.xlu0 %1281 }
 0x3cd   : > { %1362 = vst.msk [vmem:[%s3678_s4 + $0x98] sm:$0xff] %vm1342_vm1, %v1284_v35  ;;  %v1304_v42 = vpop.permute.xlu2 %1303 }
 0x3ce   : > { %1361 = vst.msk [vmem:[%s3678_s4 + $0x90] sm:$0xff] %vm1342_vm1, %v1282_v37 }
 0x3cf   : > { %1372 = vst.msk [vmem:[%s3678_s4 + $0xe8] sm:$0xff] %vm1342_vm1, %v1304_v42 }
 0x3d4   : > { %v1290_v45 = vpop.permute.xlu1 %1289  ;;  %v1288_v47 = vpop.permute.xlu0 %1287 }
 0x3d5   : > { %1365 = vst.msk [vmem:[%s3678_s4 + $0xb0] sm:$0xff] %vm1342_vm1, %v1290_v45 }
 0x3d6   : > { %1364 = vst.msk [vmem:[%s3678_s4 + $0xa8] sm:$0xff] %vm1342_vm1, %v1288_v47 }
 0x3dc   : > { %v1296_v48 = vpop.permute.xlu1 %1295  ;;  %v1294_v52 = vpop.permute.xlu0 %1293 }
 0x3dd   : > { %1368 = vst.msk [vmem:[%s3678_s4 + $0xc8] sm:$0xff] %vm1342_vm1, %v1296_v48 }
 0x3de   : > { %1367 = vst.msk [vmem:[%s3678_s4 + $0xc0] sm:$0xff] %vm1342_vm1, %v1294_v52 }
 0x3e4   : > { %v1302_v54 = vpop.permute.xlu1 %1301  ;;  %v1300_v56 = vpop.permute.xlu0 %1299 }
 0x3e5   : > { %1371 = vst.msk [vmem:[%s3678_s4 + $0xe0] sm:$0xff] %vm1342_vm1, %v1302_v54 }
 0x3e6   : > { %1370 = vst.msk [vmem:[%s3678_s4 + $0xd8] sm:$0xff] %vm1342_vm1, %v1300_v56 }
 0x3ec   : > { %v1308_v58 = vpop.permute.xlu1 %1307  ;;  %v1306_v61 = vpop.permute.xlu0 %1305 }
 0x3ed   : > { %1374 = vst.msk [vmem:[%s3678_s4 + $0xf8] sm:$0xff] %vm1342_vm1, %v1308_v58 }
 0x3ee   : > { %1373 = vst.msk [vmem:[%s3678_s4 + $0xf0] sm:$0xff] %vm1342_vm1, %v1306_v61 }
 0x3ef PF: > { %p2012_p8 = scmp.ne.s32.totalorder %s2300_s15, 2 }
 0x3f0   : > { %s2312_s25 = smov (!%p2012_p8), 16  }
 0x3f1   : > { %1378 = sbr.rel (%p2012_p8) target bundleno = 1211 (0x4bb), region = 56 }
 0x3f6   : > { %1415 = vrot.lane.b32.xlu1 %v2793_v19, %s2312_s25  ;;  %1411 = vrot.lane.b32.xlu0 %v2775_v4, %s2312_s25  ;;  %vm1508_vm2 = vcmask 195712  }
 0x3f7   : > { %1419 = vrot.lane.b32.xlu2 %v2811_v38, %s2312_s25 }
 0x3fe   : > { %1417 = vrot.lane.b32.xlu1 %v2801_v28, %s2312_s25  ;;  %1413 = vrot.lane.b32.xlu0 %v2781_v11, %s2312_s25 }
 0x3ff   : > { %1421 = vrot.lane.b32.xlu2 %v2825_v50, %s2312_s25 }
 0x406   : > { %1425 = vrot.lane.b32.xlu1 %v2843_v6, %s2312_s25  ;;  %1423 = vrot.lane.b32.xlu0 %v2829_v44, %s2312_s25 }
 0x407   : > { %1427 = vrot.lane.b32.xlu2 %v2847_v55, %s2312_s25 }
 0x40e   : > { %1431 = vrot.lane.b32.xlu1 %v2865_v8, %s2312_s25  ;;  %1429 = vrot.lane.b32.xlu0 %v2861_v26, %s2312_s25 }
 0x40f   : > { %1433 = vrot.lane.b32.xlu2 %v2875_v40, %s2312_s25 }
 0x416   : > { %1437 = vrot.lane.b32.xlu1 %v2883_v57, %s2312_s25  ;;  %1435 = vrot.lane.b32.xlu0 %v2879_v49, %s2312_s25 }
 0x417   : > { %1439 = vrot.lane.b32.xlu2 %v2887_v0, %s2312_s25 }
 0x41e   : > { %1443 = vrot.lane.b32.xlu1 %v2895_v14, %s2312_s25  ;;  %1441 = vrot.lane.b32.xlu0 %v2891_v5, %s2312_s25 }
 0x41f   : > { %1445 = vrot.lane.b32.xlu2 %v2899_v21, %s2312_s25 }
 0x426   : > { %1449 = vrot.lane.b32.xlu1 %v2907_v33, %s2312_s25  ;;  %1447 = vrot.lane.b32.xlu0 %v2903_v27, %s2312_s25 }
 0x427   : > { %1451 = vrot.lane.b32.xlu2 %v2911_v39, %s2312_s25 }
 0x42e   : > { %1455 = vrot.lane.b32.xlu1 %v2919_v59, %s2312_s25  ;;  %1453 = vrot.lane.b32.xlu0 %v2915_v51, %s2312_s25 }
 0x42f   : > { %1457 = vrot.lane.b32.xlu2 %v2922_v62, %s2312_s25 }
 0x436   : > { %1461 = vrot.lane.b32.xlu1 %v2817_v43, %s2312_s25  ;;  %1459 = vrot.lane.b32.xlu0 %v2813_v41, %s2312_s25 }
 0x437   : > { %1463 = vrot.lane.b32.xlu2 %v2831_v46, %s2312_s25 }
 0x43e   : > { %1467 = vrot.lane.b32.xlu1 %v2849_v60, %s2312_s25  ;;  %1465 = vrot.lane.b32.xlu0 %v2835_v63, %s2312_s25 }
 0x43f   : > { %1469 = vrot.lane.b32.xlu2 %v2853_v20, %s2312_s25 }
 0x446   : > { %1473 = vrot.lane.b32.xlu1 %v2871_v36, %s2312_s25  ;;  %1471 = vrot.lane.b32.xlu0 %v2867_v13, %s2312_s25 }
 0x451   : > { %v1420_v53 = vpop.permute.xlu2 %1419 }
 0x452   : > { %1513 = vst.msk [vmem:[%s3678_s4 + $0x20] sm:$0xff] %vm1508_vm2, %v1420_v53 }
 0x459   : > { %v1422_v1 = vpop.permute.xlu2 %1421 }
 0x45a   : > { %1514 = vst.msk [vmem:[%s3678_s4 + $0x28] sm:$0xff] %vm1508_vm2, %v1422_v1 }
 0x461   : > { %v1428_v2 = vpop.permute.xlu2 %1427 }
 0x462   : > { %1517 = vst.msk [vmem:[%s3678_s4 + $0x40] sm:$0xff] %vm1508_vm2, %v1428_v2 }
 0x468   : > { %v1416_v3 = vpop.permute.xlu1 %1415  ;;  %v1412_v7 = vpop.permute.xlu0 %1411 }
 0x469   : > { %1511 = vst.msk [vmem:[%s3678_s4 + $0x10] sm:$0xff] %vm1508_vm2, %v1416_v3  ;;  %v1434_v9 = vpop.permute.xlu2 %1433 }
 0x46a   : > { %1509 = vst.msk [vmem:[%s3678_s4] sm:$0xff] %vm1508_vm2, %v1412_v7 }
 0x46b   : > { %1520 = vst.msk [vmem:[%s3678_s4 + $0x58] sm:$0xff] %vm1508_vm2, %v1434_v9 }
 0x470   : > { %v1418_v10 = vpop.permute.xlu1 %1417  ;;  %v1414_v12 = vpop.permute.xlu0 %1413 }
 0x471   : > { %1512 = vst.msk [vmem:[%s3678_s4 + $0x18] sm:$0xff] %vm1508_vm2, %v1418_v10  ;;  %v1440_v15 = vpop.permute.xlu2 %1439 }
 0x472   : > { %1510 = vst.msk [vmem:[%s3678_s4 + $0x8] sm:$0xff] %vm1508_vm2, %v1414_v12 }
 0x473   : > { %1523 = vst.msk [vmem:[%s3678_s4 + $0x70] sm:$0xff] %vm1508_vm2, %v1440_v15 }
 0x478   : > { %v1426_v16 = vpop.permute.xlu1 %1425  ;;  %v1424_v17 = vpop.permute.xlu0 %1423 }
 0x479   : > { %1516 = vst.msk [vmem:[%s3678_s4 + $0x38] sm:$0xff] %vm1508_vm2, %v1426_v16  ;;  %v1446_v18 = vpop.permute.xlu2 %1445 }
 0x47a   : > { %1515 = vst.msk [vmem:[%s3678_s4 + $0x30] sm:$0xff] %vm1508_vm2, %v1424_v17 }
 0x47b   : > { %1526 = vst.msk [vmem:[%s3678_s4 + $0x88] sm:$0xff] %vm1508_vm2, %v1446_v18 }
 0x480   : > { %v1432_v22 = vpop.permute.xlu1 %1431  ;;  %v1430_v23 = vpop.permute.xlu0 %1429 }
 0x481   : > { %1519 = vst.msk [vmem:[%s3678_s4 + $0x50] sm:$0xff] %vm1508_vm2, %v1432_v22  ;;  %v1452_v24 = vpop.permute.xlu2 %1451 }
 0x482   : > { %1518 = vst.msk [vmem:[%s3678_s4 + $0x48] sm:$0xff] %vm1508_vm2, %v1430_v23 }
 0x483   : > { %1529 = vst.msk [vmem:[%s3678_s4 + $0xa0] sm:$0xff] %vm1508_vm2, %v1452_v24 }
 0x488   : > { %v1438_v25 = vpop.permute.xlu1 %1437  ;;  %v1436_v29 = vpop.permute.xlu0 %1435 }
 0x489   : > { %1522 = vst.msk [vmem:[%s3678_s4 + $0x68] sm:$0xff] %vm1508_vm2, %v1438_v25  ;;  %v1458_v30 = vpop.permute.xlu2 %1457 }
 0x48a   : > { %1521 = vst.msk [vmem:[%s3678_s4 + $0x60] sm:$0xff] %vm1508_vm2, %v1436_v29 }
 0x48b   : > { %1532 = vst.msk [vmem:[%s3678_s4 + $0xb8] sm:$0xff] %vm1508_vm2, %v1458_v30 }
 0x490   : > { %v1444_v31 = vpop.permute.xlu1 %1443  ;;  %v1442_v32 = vpop.permute.xlu0 %1441 }
 0x491   : > { %1525 = vst.msk [vmem:[%s3678_s4 + $0x80] sm:$0xff] %vm1508_vm2, %v1444_v31  ;;  %v1464_v34 = vpop.permute.xlu2 %1463 }
 0x492   : > { %1524 = vst.msk [vmem:[%s3678_s4 + $0x78] sm:$0xff] %vm1508_vm2, %v1442_v32 }
 0x493   : > { %1535 = vst.msk [vmem:[%s3678_s4 + $0xd0] sm:$0xff] %vm1508_vm2, %v1464_v34 }
 0x498   : > { %v1450_v35 = vpop.permute.xlu1 %1449  ;;  %v1448_v37 = vpop.permute.xlu0 %1447 }
 0x499   : > { %1528 = vst.msk [vmem:[%s3678_s4 + $0x98] sm:$0xff] %vm1508_vm2, %v1450_v35  ;;  %v1470_v42 = vpop.permute.xlu2 %1469 }
 0x49a   : > { %1527 = vst.msk [vmem:[%s3678_s4 + $0x90] sm:$0xff] %vm1508_vm2, %v1448_v37 }
 0x49b   : > { %1538 = vst.msk [vmem:[%s3678_s4 + $0xe8] sm:$0xff] %vm1508_vm2, %v1470_v42 }
 0x4a0   : > { %v1456_v45 = vpop.permute.xlu1 %1455  ;;  %v1454_v47 = vpop.permute.xlu0 %1453 }
 0x4a1   : > { %1531 = vst.msk [vmem:[%s3678_s4 + $0xb0] sm:$0xff] %vm1508_vm2, %v1456_v45 }
 0x4a2   : > { %1530 = vst.msk [vmem:[%s3678_s4 + $0xa8] sm:$0xff] %vm1508_vm2, %v1454_v47 }
 0x4a8   : > { %v1462_v48 = vpop.permute.xlu1 %1461  ;;  %v1460_v52 = vpop.permute.xlu0 %1459 }
 0x4a9   : > { %1534 = vst.msk [vmem:[%s3678_s4 + $0xc8] sm:$0xff] %vm1508_vm2, %v1462_v48 }
 0x4aa   : > { %1533 = vst.msk [vmem:[%s3678_s4 + $0xc0] sm:$0xff] %vm1508_vm2, %v1460_v52 }
 0x4b0   : > { %v1468_v54 = vpop.permute.xlu1 %1467  ;;  %v1466_v56 = vpop.permute.xlu0 %1465 }
 0x4b1   : > { %1537 = vst.msk [vmem:[%s3678_s4 + $0xe0] sm:$0xff] %vm1508_vm2, %v1468_v54 }
 0x4b2   : > { %1536 = vst.msk [vmem:[%s3678_s4 + $0xd8] sm:$0xff] %vm1508_vm2, %v1466_v56 }
 0x4b8   : > { %v1474_v58 = vpop.permute.xlu1 %1473  ;;  %v1472_v61 = vpop.permute.xlu0 %1471 }
 0x4b9   : > { %1540 = vst.msk [vmem:[%s3678_s4 + $0xf8] sm:$0xff] %vm1508_vm2, %v1474_v58 }
 0x4ba   : > { %1539 = vst.msk [vmem:[%s3678_s4 + $0xf0] sm:$0xff] %vm1508_vm2, %v1472_v61 }
 0x4bb PF: > { %p2013_p9 = scmp.ne.s32.totalorder %s2300_s15, 3 }
 0x4bc   : > { %s2313_s24 = smov (!%p2013_p9), 24  }
 0x4bd   : > { %1544 = sbr.rel (%p2013_p9) target bundleno = 1415 (0x587), region = 60 }
 0x4c2   : > { %1581 = vrot.lane.b32.xlu1 %v2793_v19, %s2313_s24  ;;  %1577 = vrot.lane.b32.xlu0 %v2775_v4, %s2313_s24  ;;  %vm1674_vm3 = vcmask 203968  }
 0x4c3   : > { %1585 = vrot.lane.b32.xlu2 %v2811_v38, %s2313_s24 }
 0x4ca   : > { %1583 = vrot.lane.b32.xlu1 %v2801_v28, %s2313_s24  ;;  %1579 = vrot.lane.b32.xlu0 %v2781_v11, %s2313_s24 }
 0x4cb   : > { %1587 = vrot.lane.b32.xlu2 %v2825_v50, %s2313_s24 }
 0x4d2   : > { %1591 = vrot.lane.b32.xlu1 %v2843_v6, %s2313_s24  ;;  %1589 = vrot.lane.b32.xlu0 %v2829_v44, %s2313_s24 }
 0x4d3   : > { %1593 = vrot.lane.b32.xlu2 %v2847_v55, %s2313_s24 }
 0x4da   : > { %1597 = vrot.lane.b32.xlu1 %v2865_v8, %s2313_s24  ;;  %1595 = vrot.lane.b32.xlu0 %v2861_v26, %s2313_s24 }
 0x4db   : > { %1599 = vrot.lane.b32.xlu2 %v2875_v40, %s2313_s24 }
 0x4e2   : > { %1603 = vrot.lane.b32.xlu1 %v2883_v57, %s2313_s24  ;;  %1601 = vrot.lane.b32.xlu0 %v2879_v49, %s2313_s24 }
 0x4e3   : > { %1605 = vrot.lane.b32.xlu2 %v2887_v0, %s2313_s24 }
 0x4ea   : > { %1609 = vrot.lane.b32.xlu1 %v2895_v14, %s2313_s24  ;;  %1607 = vrot.lane.b32.xlu0 %v2891_v5, %s2313_s24 }
 0x4eb   : > { %1611 = vrot.lane.b32.xlu2 %v2899_v21, %s2313_s24 }
 0x4f2   : > { %1615 = vrot.lane.b32.xlu1 %v2907_v33, %s2313_s24  ;;  %1613 = vrot.lane.b32.xlu0 %v2903_v27, %s2313_s24 }
 0x4f3   : > { %1617 = vrot.lane.b32.xlu2 %v2911_v39, %s2313_s24 }
 0x4fa   : > { %1621 = vrot.lane.b32.xlu1 %v2919_v59, %s2313_s24  ;;  %1619 = vrot.lane.b32.xlu0 %v2915_v51, %s2313_s24 }
 0x4fb   : > { %1623 = vrot.lane.b32.xlu2 %v2922_v62, %s2313_s24 }
 0x502   : > { %1627 = vrot.lane.b32.xlu1 %v2817_v43, %s2313_s24  ;;  %1625 = vrot.lane.b32.xlu0 %v2813_v41, %s2313_s24 }
 0x503   : > { %1629 = vrot.lane.b32.xlu2 %v2831_v46, %s2313_s24 }
 0x50a   : > { %1633 = vrot.lane.b32.xlu1 %v2849_v60, %s2313_s24  ;;  %1631 = vrot.lane.b32.xlu0 %v2835_v63, %s2313_s24 }
 0x50b   : > { %1635 = vrot.lane.b32.xlu2 %v2853_v20, %s2313_s24 }
 0x512   : > { %1639 = vrot.lane.b32.xlu1 %v2871_v36, %s2313_s24  ;;  %1637 = vrot.lane.b32.xlu0 %v2867_v13, %s2313_s24 }
 0x51d   : > { %v1586_v4 = vpop.permute.xlu2 %1585 }
 0x51e   : > { %1679 = vst.msk [vmem:[%s3678_s4 + $0x20] sm:$0xff] %vm1674_vm3, %v1586_v4 }
 0x525   : > { %v1588_v11 = vpop.permute.xlu2 %1587 }
 0x526   : > { %1680 = vst.msk [vmem:[%s3678_s4 + $0x28] sm:$0xff] %vm1674_vm3, %v1588_v11 }
 0x52d   : > { %v1594_v19 = vpop.permute.xlu2 %1593 }
 0x52e   : > { %1683 = vst.msk [vmem:[%s3678_s4 + $0x40] sm:$0xff] %vm1674_vm3, %v1594_v19 }
 0x534   : > { %v1582_v28 = vpop.permute.xlu1 %1581  ;;  %v1578_v38 = vpop.permute.xlu0 %1577 }
 0x535   : > { %1677 = vst.msk [vmem:[%s3678_s4 + $0x10] sm:$0xff] %vm1674_vm3, %v1582_v28  ;;  %v1600_v41 = vpop.permute.xlu2 %1599 }
 0x536   : > { %1675 = vst.msk [vmem:[%s3678_s4] sm:$0xff] %vm1674_vm3, %v1578_v38 }
 0x537   : > { %1686 = vst.msk [vmem:[%s3678_s4 + $0x58] sm:$0xff] %vm1674_vm3, %v1600_v41 }
 0x53c   : > { %v1584_v43 = vpop.permute.xlu1 %1583  ;;  %v1580_v50 = vpop.permute.xlu0 %1579 }
 0x53d   : > { %1678 = vst.msk [vmem:[%s3678_s4 + $0x18] sm:$0xff] %vm1674_vm3, %v1584_v43  ;;  %v1606_v44 = vpop.permute.xlu2 %1605 }
 0x53e   : > { %1676 = vst.msk [vmem:[%s3678_s4 + $0x8] sm:$0xff] %vm1674_vm3, %v1580_v50 }
 0x53f   : > { %1689 = vst.msk [vmem:[%s3678_s4 + $0x70] sm:$0xff] %vm1674_vm3, %v1606_v44 }
 0x544   : > { %v1592_v46 = vpop.permute.xlu1 %1591  ;;  %v1590_v63 = vpop.permute.xlu0 %1589 }
 0x545   : > { %1682 = vst.msk [vmem:[%s3678_s4 + $0x38] sm:$0xff] %vm1674_vm3, %v1592_v46  ;;  %v1612_v6 = vpop.permute.xlu2 %1611 }
 0x546   : > { %1681 = vst.msk [vmem:[%s3678_s4 + $0x30] sm:$0xff] %vm1674_vm3, %v1590_v63 }
 0x547   : > { %1692 = vst.msk [vmem:[%s3678_s4 + $0x88] sm:$0xff] %vm1674_vm3, %v1612_v6 }
 0x54c   : > { %v1598_v55 = vpop.permute.xlu1 %1597  ;;  %v1596_v60 = vpop.permute.xlu0 %1595 }
 0x54d   : > { %1685 = vst.msk [vmem:[%s3678_s4 + $0x50] sm:$0xff] %vm1674_vm3, %v1598_v55  ;;  %v1618_v20 = vpop.permute.xlu2 %1617 }
 0x54e   : > { %1684 = vst.msk [vmem:[%s3678_s4 + $0x48] sm:$0xff] %vm1674_vm3, %v1596_v60 }
 0x54f   : > { %1695 = vst.msk [vmem:[%s3678_s4 + $0xa0] sm:$0xff] %vm1674_vm3, %v1618_v20 }
 0x554   : > { %v1604_v26 = vpop.permute.xlu1 %1603  ;;  %v1602_v8 = vpop.permute.xlu0 %1601 }
 0x555   : > { %1688 = vst.msk [vmem:[%s3678_s4 + $0x68] sm:$0xff] %vm1674_vm3, %v1604_v26  ;;  %v1624_v13 = vpop.permute.xlu2 %1623 }
 0x556   : > { %1687 = vst.msk [vmem:[%s3678_s4 + $0x60] sm:$0xff] %vm1674_vm3, %v1602_v8 }
 0x557   : > { %1698 = vst.msk [vmem:[%s3678_s4 + $0xb8] sm:$0xff] %vm1674_vm3, %v1624_v13 }
 0x55c   : > { %v1610_v36 = vpop.permute.xlu1 %1609  ;;  %v1608_v40 = vpop.permute.xlu0 %1607 }
 0x55d   : > { %1691 = vst.msk [vmem:[%s3678_s4 + $0x80] sm:$0xff] %vm1674_vm3, %v1610_v36  ;;  %v1630_v49 = vpop.permute.xlu2 %1629 }
 0x55e   : > { %1690 = vst.msk [vmem:[%s3678_s4 + $0x78] sm:$0xff] %vm1674_vm3, %v1608_v40 }
 0x55f   : > { %1701 = vst.msk [vmem:[%s3678_s4 + $0xd0] sm:$0xff] %vm1674_vm3, %v1630_v49 }
 0x564   : > { %v1616_v57 = vpop.permute.xlu1 %1615  ;;  %v1614_v0 = vpop.permute.xlu0 %1613 }
 0x565   : > { %1694 = vst.msk [vmem:[%s3678_s4 + $0x98] sm:$0xff] %vm1674_vm3, %v1616_v57  ;;  %v1636_v5 = vpop.permute.xlu2 %1635 }
 0x566   : > { %1693 = vst.msk [vmem:[%s3678_s4 + $0x90] sm:$0xff] %vm1674_vm3, %v1614_v0 }
 0x567   : > { %1704 = vst.msk [vmem:[%s3678_s4 + $0xe8] sm:$0xff] %vm1674_vm3, %v1636_v5 }
 0x56c   : > { %v1622_v14 = vpop.permute.xlu1 %1621  ;;  %v1620_v21 = vpop.permute.xlu0 %1619 }
 0x56d   : > { %1697 = vst.msk [vmem:[%s3678_s4 + $0xb0] sm:$0xff] %vm1674_vm3, %v1622_v14 }
 0x56e   : > { %1696 = vst.msk [vmem:[%s3678_s4 + $0xa8] sm:$0xff] %vm1674_vm3, %v1620_v21 }
 0x574   : > { %v1628_v27 = vpop.permute.xlu1 %1627  ;;  %v1626_v33 = vpop.permute.xlu0 %1625 }
 0x575   : > { %1700 = vst.msk [vmem:[%s3678_s4 + $0xc8] sm:$0xff] %vm1674_vm3, %v1628_v27 }
 0x576   : > { %1699 = vst.msk [vmem:[%s3678_s4 + $0xc0] sm:$0xff] %vm1674_vm3, %v1626_v33 }
 0x57c   : > { %v1634_v39 = vpop.permute.xlu1 %1633  ;;  %v1632_v51 = vpop.permute.xlu0 %1631 }
 0x57d   : > { %1703 = vst.msk [vmem:[%s3678_s4 + $0xe0] sm:$0xff] %vm1674_vm3, %v1634_v39 }
 0x57e   : > { %1702 = vst.msk [vmem:[%s3678_s4 + $0xd8] sm:$0xff] %vm1674_vm3, %v1632_v51 }
 0x584   : > { %v1640_v59 = vpop.permute.xlu1 %1639  ;;  %v1638_v62 = vpop.permute.xlu0 %1637 }
 0x585   : > { %1706 = vst.msk [vmem:[%s3678_s4 + $0xf8] sm:$0xff] %vm1674_vm3, %v1640_v59 }
 0x586   : > { %1705 = vst.msk [vmem:[%s3678_s4 + $0xf0] sm:$0xff] %vm1674_vm3, %v1638_v62 }
 0x587 PF: > { %s14_s17 = sadd.s32 1, %s2308_s17   ;;  %s3679_s15 = smov %s2304_s16 }
 0x588   : > { %p11_p10 = scmp.ge.s32.totalorder %s14_s17, 6   ;;  %s3680_s16 = smov %s3682_s18 }
 0x58a   :  { %13 = sbr.rel (!%p11_p10) target bundleno = 2 (0x2), region = 97 }

</bundles_post_ra>
